<compile_context>
chip_gen: v5e
topology: v5e:2x2
jax: 0.10.0
libtpu: 0.0.40
codegen_flags: <defaults>
</compile_context>

<pallas_src>
import numpy as np

import jax
import jax.numpy as jnp
from jax import lax
from jax.experimental import pallas as pl
from jax.experimental.pallas import tpu as pltpu  # noqa: F401  (kept for TPU-specific extensions)

# ---------------- small-shape configuration (scaled-down ResNet analogue) ----
N_FEATURES = 64          # tabular features -> 8x8 Tab2Img image
TAB_HW = 8               # small image side produced by Tab2Img
INPUT_HW = 16            # analogue of the module's input_shape (224, 224)
STEM_C = 16              # analogue of ResNet stem channels (64)
MID_C = 8                # bottleneck mid channels
OUT_C = 32               # analogue of 2048 output channels
OUT_HW = 4               # analogue of the 7x7 output spatial grid

K_STEM = 3 * 3 * 3       # stem im2col contraction (27)
K_STEM_PAD = 32          # padded to a sublane multiple; column 27 is the constant bias lane
OUT_PAD = 128            # lane-dense output channel padding (unmasked vst)
STEM_HW = INPUT_HW // 2  # 8
N_STEM_PIX = STEM_HW * STEM_HW        # 64
N_OUT_PIX = OUT_HW * OUT_HW           # 16
N_TAPS = 9
SLAB_ROWS = 56           # 32 (stem) + 16 (c1) + 8 (c2 taps)
SLAB_COLS = N_TAPS * MID_C            # 72
EPI_K = 32               # MID_C + STEM_C + bias lane + zero pad


# ---------------------------- fused Pallas kernel ----------------------------
def _fused_backbone_kernel(patches_ref, slab_ref, w3sc_ref, o_ref):
    f32 = jnp.float32

    # ---- in-kernel 0/1 selection masks (no DMA; pure VPU iota/compare ops) ----
    # S2: (144, 64), tap-major rows r = t*16 + o.  S2[r, p] = 1 iff stem pixel p feeds tap t
    # of output pixel o in the 3x3 / stride-2 / pad-1 conv (zero rows implement the padding).
    r = lax.broadcasted_iota(jnp.int32, (N_TAPS * N_OUT_PIX, N_STEM_PIX), 0)
    p = lax.broadcasted_iota(jnp.int32, (N_TAPS * N_OUT_PIX, N_STEM_PIX), 1)
    t = r >> 4
    o = r & 15
    di = jnp.where(t >= 6, 2, jnp.where(t >= 3, 1, 0))   # t // 3 without a vector divide
    dj = t - 3 * di
    ih = 2 * (o >> 2) + di - 1
    iw = 2 * (o & 3) + dj - 1
    valid = (ih >= 0) & (ih < STEM_HW) & (iw >= 0) & (iw < STEM_HW)
    s2 = jnp.where(valid & (p == ih * STEM_HW + iw), 1.0, 0.0)

    # Ssc: (16, 64) stride-2 spatial subsample for the 1x1 projection shortcut.
    ro = lax.broadcasted_iota(jnp.int32, (N_OUT_PIX, N_STEM_PIX), 0)
    pc = lax.broadcasted_iota(jnp.int32, (N_OUT_PIX, N_STEM_PIX), 1)
    ssc = jnp.where(pc == (ro >> 2) * (2 * STEM_HW) + (ro & 3) * 2, 1.0, 0.0)

    # ---- packed weight views (static, lane-0-aligned slices of one slab) ----
    wstem = slab_ref[0:32, 0:STEM_C]        # (32, 16)  row 27 carries the stem bias
    w1 = slab_ref[32:48, 0:MID_C]           # (16, 8)
    wcat = slab_ref[48:56, 0:SLAB_COLS]     # (8, 72)   [W_0 | W_1 | ... | W_8]

    # stem 3x3/s2/p1 conv: one matmul over im2col patches; bias folded via ones column 27
    y = jnp.maximum(jnp.dot(patches_ref[...], wstem, preferred_element_type=f32), 0.0)  # (64,16)

    # c1 1x1 conv (+ReLU); its bias is zero and dropped
    a1 = jnp.maximum(jnp.dot(y, w1, preferred_element_type=f32), 0.0)                   # (64,8)

    # c2 3x3/s2/p1 conv as 2 stacked matmuls + diagonal-block gather (no reshape needed)
    z = jnp.dot(a1, wcat, preferred_element_type=f32)        # (64,72):  z[p, t*8+n]
    yy = jnp.dot(s2, z, preferred_element_type=f32)          # (144,72): yy[t*16+o, t*8+n]
    acc = yy[0:N_OUT_PIX, 0:MID_C]
    for tap in range(1, N_TAPS):                             # 8 tiny static value slices + adds
        acc = acc + yy[tap * N_OUT_PIX:(tap + 1) * N_OUT_PIX,
                       tap * MID_C:(tap + 1) * MID_C]
    a2 = jnp.maximum(acc, 0.0)                               # (16,8)

    # projection shortcut input: stride-2 subsample of the stem activation
    y_s = jnp.dot(ssc, y, preferred_element_type=f32)        # (16,16)

    # fused epilogue: [a2 | y_s | bias-lane] @ [W3 ; Wsc ; b3+bsc ; 0]  -> ONE matmul doing
    # c3, the projection shortcut, the residual add and both output biases; single ReLU,
    # single lane-dense (16,128) store.
    bias_lane = jnp.where(
        lax.broadcasted_iota(jnp.int32, (N_OUT_PIX, EPI_K - MID_C - STEM_C), 1) == 0, 1.0, 0.0)
    lhs = jnp.concatenate([a2, y_s, bias_lane], axis=1)      # (16,32)
    out = jnp.dot(lhs, w3sc_ref[...], preferred_element_type=f32)  # (16,128)
    o_ref[...] = jnp.maximum(out, 0.0)


def fused_backbone(patches, slab, w3sc):
    # Single-invocation kernel (no grid): every operand is one whole-array VMEM block, no
    # degenerate pipeline.  If the caller ever batches, add a leading "parallel" grid axis
    # over samples (uses both v7x TensorCores; v5e/v6e just loop).
    inputs = (patches, slab, w3sc)
    return pl.pallas_call(
        _fused_backbone_kernel,
        out_shape=jax.ShapeDtypeStruct((N_OUT_PIX, OUT_PAD), jnp.float32),
        in_specs=[pl.BlockSpec(x.shape, lambda: (0, 0)) for x in inputs],
        out_specs=pl.BlockSpec((N_OUT_PIX, OUT_PAD), lambda: (0, 0)),
    )(*inputs)


# ------------- pre-backbone glue, expressed once so it can be precomposed ----
def _glue_patches_flat(x_row, perm):
    """x_row (N_FEATURES,) -> flattened (64*32,) stem im2col patches.  Affine in x_row.

    Reproduces: Tab2Img permutation -> 8x8 image -> nearest-neighbour upscale to 16x16 ->
    3-channel stack -> Keras 'caffe' preprocess (RGB->BGR, mean subtraction) ->
    3x3/stride-2/pad-1 im2col -> pad K 27->32 with a constant 1.0 bias lane at column 27.
    """
    img_small = x_row[perm].reshape(TAB_HW, TAB_HW)
    rep = INPUT_HW // TAB_HW
    m = jnp.repeat(jnp.repeat(img_small, rep, axis=0), rep, axis=1)        # (16,16)
    img = jnp.stack([m, m, m], axis=-1)                                    # (16,16,3)
    mean = jnp.array([103.939, 116.779, 123.68], jnp.float32)
    img = img[..., ::-1].astype(jnp.float32) - mean
    xp = jnp.pad(img, ((1, 1), (1, 1), (0, 0)))
    cols = []
    for i in range(3):
        for j in range(3):
            cols.append(lax.slice(
                xp, (i, j, 0),
                (i + 2 * (STEM_HW - 1) + 1, j + 2 * (STEM_HW - 1) + 1, 3),
                (2, 2, 1)))
    patches = jnp.concatenate(cols, axis=-1).reshape(N_STEM_PIX, K_STEM)   # (64,27)
    bias_lane = jnp.ones((N_STEM_PIX, 1), jnp.float32)
    zpad = jnp.zeros((N_STEM_PIX, K_STEM_PAD - K_STEM - 1), jnp.float32)
    return jnp.concatenate([patches, bias_lane, zpad], axis=1).reshape(-1)


# ---------------------------- parameters -------------------------------------
def init_params(key):
    ks = jax.random.split(key, 9)

    def w(k, shape, fan_in):
        return jax.random.normal(k, shape, jnp.float32) * (1.0 / float(np.sqrt(fan_in)))

    perm = jax.random.permutation(ks[0], N_FEATURES)   # stand-in for the fitted Tab2Img map
    stem_w = w(ks[1], (3, 3, 3, STEM_C), K_STEM)
    c1_w = w(ks[2], (1, 1, STEM_C, MID_C), STEM_C)
    c2_w = w(ks[3], (3, 3, MID_C, MID_C), 9 * MID_C)
    c3_w = w(ks[4], (1, 1, MID_C, OUT_C), MID_C)
    sc_w = w(ks[5], (1, 1, STEM_C, OUT_C), STEM_C)
    stem_b = 0.1 * jax.random.normal(ks[6], (STEM_C,), jnp.float32)
    c3_b = 0.1 * jax.random.normal(ks[7], (OUT_C,), jnp.float32)
    sc_b = 0.1 * jax.random.normal(ks[8], (OUT_C,), jnp.float32)
    # c1/c2 conv biases are zero (as before) and therefore dropped from the kernel entirely.

    # -- packed weight slab: stem (rows 0..31, bias in row 27), c1 (rows 32..47), c2 taps (48..55)
    slab = np.zeros((SLAB_ROWS, SLAB_COLS), np.float32)
    slab[0:K_STEM, 0:STEM_C] = np.asarray(stem_w).reshape(K_STEM, STEM_C)
    slab[K_STEM, 0:STEM_C] = np.asarray(stem_b)
    slab[32:48, 0:MID_C] = np.asarray(c1_w).reshape(STEM_C, MID_C)
    slab[48:56, 0:SLAB_COLS] = (np.asarray(c2_w).reshape(N_TAPS, MID_C, MID_C)
                                .transpose(1, 0, 2).reshape(MID_C, N_TAPS * MID_C))

    # -- fused epilogue weights: [W3 ; Wsc ; b3+bsc ; 0], zero-padded to 128 output lanes
    w3sc = np.zeros((EPI_K, OUT_PAD), np.float32)
    w3sc[0:MID_C, 0:OUT_C] = np.asarray(c3_w).reshape(MID_C, OUT_C)
    w3sc[MID_C:MID_C + STEM_C, 0:OUT_C] = np.asarray(sc_w).reshape(STEM_C, OUT_C)
    w3sc[MID_C + STEM_C, 0:OUT_C] = np.asarray(c3_b + sc_b)

    # -- precompose ALL pre-backbone glue into one affine map: patches = x @ G + c
    glue = lambda xr: _glue_patches_flat(xr, perm)
    c_pad = glue(jnp.zeros((N_FEATURES,), jnp.float32))
    G_pad = jax.vmap(glue)(jnp.eye(N_FEATURES, dtype=jnp.float32)) - c_pad[None, :]

    params = {"G_pad": G_pad, "c_pad": c_pad,
              "slab": jnp.asarray(slab), "w3sc": jnp.asarray(w3sc)}
    raw = {"perm": np.asarray(perm),
           "stem_w": np.asarray(stem_w), "stem_b": np.asarray(stem_b),
           "c1_w": np.asarray(c1_w), "c2_w": np.asarray(c2_w),
           "c3_w": np.asarray(c3_w), "c3_b": np.asarray(c3_b),
           "sc_w": np.asarray(sc_w), "sc_b": np.asarray(sc_b)}
    return params, raw


# ---------------------------- forward -----------------------------------------
@jax.jit
def image_embedding_forward(x_tab, params):
    """Mirrors ImageEmbedding.forward at small scale; returns embeddings[0] (4, 4, 32)."""
    if x_tab.ndim == 1:
        x_tab = x_tab[None]
    # entire Tab2Img / resize / preprocess / stem-im2col glue == ONE precomposed affine dot
    pflat = x_tab[0] @ params["G_pad"] + params["c_pad"]            # (2048,)
    patches = pflat.reshape(N_STEM_PIX, K_STEM_PAD)                 # (64, 32), col 27 == 1.0
    out = fused_backbone(patches, params["slab"], params["w3sc"])   # (16, 128) lane-dense
    return out[:, :OUT_C].reshape(OUT_HW, OUT_HW, OUT_C)


# ---------------------------- independent NumPy reference ---------------------
def _np_conv(x, w, b, stride, pad):
    H, W, _ = x.shape
    kh, kw, _, cout = w.shape
    xp = np.pad(x, ((pad, pad), (pad, pad), (0, 0)))
    ho = (H + 2 * pad - kh) // stride + 1
    wo = (W + 2 * pad - kw) // stride + 1
    out = np.zeros((ho, wo, cout), np.float32)
    wm = w.reshape(-1, cout)
    for oh in range(ho):
        for ow in range(wo):
            patch = xp[oh * stride:oh * stride + kh, ow * stride:ow * stride + kw, :]
            out[oh, ow] = patch.reshape(-1) @ wm + b
    return out


def _np_forward_reference(x_row, raw):
    img_small = np.asarray(x_row, np.float32)[raw["perm"]].reshape(TAB_HW, TAB_HW)
    rep = INPUT_HW // TAB_HW
    m = np.repeat(np.repeat(img_small, rep, axis=0), rep, axis=1)
    img = np.stack([m, m, m], axis=-1)
    mean = np.array([103.939, 116.779, 123.68], np.float32)
    img = img[..., ::-1] - mean
    y = np.maximum(_np_conv(img, raw["stem_w"], raw["stem_b"], 2, 1), 0.0)
    a1 = np.maximum(_np_conv(y, raw["c1_w"], np.zeros(MID_C, np.float32), 1, 0), 0.0)
    a2 = np.maximum(_np_conv(a1, raw["c2_w"], np.zeros(MID_C, np.float32), 2, 1), 0.0)
    c3 = _np_conv(a2, raw["c3_w"], raw["c3_b"], 1, 0)
    sc = _np_conv(y, raw["sc_w"], raw["sc_b"], 2, 0)
    return np.maximum(c3 + sc, 0.0)


# ---------------------------- main --------------------------------------------
if __name__ == "__main__":
    params, raw = init_params(jax.random.PRNGKey(0))

    # one "tabular row" input, like the module's single-sample forward
    x = 100.0 + 10.0 * jax.random.normal(
        jax.random.PRNGKey(0), (1, N_FEATURES), dtype=jnp.float32)

    emb = jax.block_until_ready(image_embedding_forward(x, params))

    assert emb.shape == (OUT_HW, OUT_HW, OUT_C), emb.shape
    assert emb.dtype == jnp.float32
    assert bool(jnp.all(jnp.isfinite(emb)))

    # tolerance check of the fully-fused kernel against an independent NumPy reference
    ref = _np_forward_reference(np.asarray(x)[0], raw)
    np.testing.assert_allclose(np.asarray(emb), ref, rtol=5e-3, atol=5e-2)

    print("KERNEL_OK")
</pallas_src>

<mosaic_0001>
module attributes {stable_mosaic.version = 11 : i64} {
  func.func @_fused_backbone_kernel(%arg0: memref<64x32xf32, #tpu.memory_space<vmem>>, %arg1: memref<56x72xf32, #tpu.memory_space<vmem>>, %arg2: memref<32x128xf32, #tpu.memory_space<vmem>>, %arg3: memref<16x128xf32, #tpu.memory_space<vmem>>) attributes {dimension_semantics = [], scalar_prefetch = 0 : i64, scratch_operands = 0 : i64, tpu.core_type = #tpu.core_type<tc>} {
    %0 = tpu.iota {dimensions = array<i32: 0>} : vector<144x64xi32>
    %1 = tpu.iota {dimensions = array<i32: 1>} : vector<144x64xi32>
    %c4_i32 = arith.constant 4 : i32
    %2 = vector.broadcast %c4_i32 : i32 to vector<144x64xi32>
    %3 = arith.shrsi %0, %2 : vector<144x64xi32>
    %c15_i32 = arith.constant 15 : i32
    %4 = vector.broadcast %c15_i32 : i32 to vector<144x64xi32>
    %5 = arith.andi %0, %4 : vector<144x64xi32>
    %c6_i32 = arith.constant 6 : i32
    %6 = vector.broadcast %c6_i32 : i32 to vector<144x64xi32>
    %7 = arith.cmpi sge, %3, %6 : vector<144x64xi32>
    %c3_i32 = arith.constant 3 : i32
    %8 = vector.broadcast %c3_i32 : i32 to vector<144x64xi32>
    %9 = arith.cmpi sge, %3, %8 : vector<144x64xi32>
    %c1_i32 = arith.constant 1 : i32
    %c0_i32 = arith.constant 0 : i32
    %10 = vector.broadcast %c1_i32 : i32 to vector<144x64xi32>
    %11 = vector.broadcast %c0_i32 : i32 to vector<144x64xi32>
    %12 = arith.select %9, %10, %11 : vector<144x64xi1>, vector<144x64xi32>
    %c2_i32 = arith.constant 2 : i32
    %13 = vector.broadcast %c2_i32 : i32 to vector<144x64xi32>
    %14 = arith.select %7, %13, %12 : vector<144x64xi1>, vector<144x64xi32>
    %c3_i32_0 = arith.constant 3 : i32
    %15 = vector.broadcast %c3_i32_0 : i32 to vector<144x64xi32>
    %16 = arith.muli %15, %14 : vector<144x64xi32>
    %17 = arith.subi %3, %16 : vector<144x64xi32>
    %c2_i32_1 = arith.constant 2 : i32
    %18 = vector.broadcast %c2_i32_1 : i32 to vector<144x64xi32>
    %19 = arith.shrsi %5, %18 : vector<144x64xi32>
    %c2_i32_2 = arith.constant 2 : i32
    %20 = vector.broadcast %c2_i32_2 : i32 to vector<144x64xi32>
    %21 = arith.muli %20, %19 : vector<144x64xi32>
    %22 = arith.addi %21, %14 : vector<144x64xi32>
    %c1_i32_3 = arith.constant 1 : i32
    %23 = vector.broadcast %c1_i32_3 : i32 to vector<144x64xi32>
    %24 = arith.subi %22, %23 : vector<144x64xi32>
    %c3_i32_4 = arith.constant 3 : i32
    %25 = vector.broadcast %c3_i32_4 : i32 to vector<144x64xi32>
    %26 = arith.andi %5, %25 : vector<144x64xi32>
    %c2_i32_5 = arith.constant 2 : i32
    %27 = vector.broadcast %c2_i32_5 : i32 to vector<144x64xi32>
    %28 = arith.muli %27, %26 : vector<144x64xi32>
    %29 = arith.addi %28, %17 : vector<144x64xi32>
    %c1_i32_6 = arith.constant 1 : i32
    %30 = vector.broadcast %c1_i32_6 : i32 to vector<144x64xi32>
    %31 = arith.subi %29, %30 : vector<144x64xi32>
    %c0_i32_7 = arith.constant 0 : i32
    %32 = vector.broadcast %c0_i32_7 : i32 to vector<144x64xi32>
    %33 = arith.cmpi sge, %24, %32 : vector<144x64xi32>
    %c8_i32 = arith.constant 8 : i32
    %34 = vector.broadcast %c8_i32 : i32 to vector<144x64xi32>
    %35 = arith.cmpi slt, %24, %34 : vector<144x64xi32>
    %36 = arith.andi %33, %35 : vector<144x64xi1>
    %c0_i32_8 = arith.constant 0 : i32
    %37 = vector.broadcast %c0_i32_8 : i32 to vector<144x64xi32>
    %38 = arith.cmpi sge, %31, %37 : vector<144x64xi32>
    %39 = arith.andi %36, %38 : vector<144x64xi1>
    %c8_i32_9 = arith.constant 8 : i32
    %40 = vector.broadcast %c8_i32_9 : i32 to vector<144x64xi32>
    %41 = arith.cmpi slt, %31, %40 : vector<144x64xi32>
    %42 = arith.andi %39, %41 : vector<144x64xi1>
    %c8_i32_10 = arith.constant 8 : i32
    %43 = vector.broadcast %c8_i32_10 : i32 to vector<144x64xi32>
    %44 = arith.muli %24, %43 : vector<144x64xi32>
    %45 = arith.addi %44, %31 : vector<144x64xi32>
    %46 = arith.cmpi eq, %1, %45 : vector<144x64xi32>
    %47 = arith.andi %42, %46 : vector<144x64xi1>
    %cst = arith.constant 1.000000e+00 : f32
    %cst_11 = arith.constant 0.000000e+00 : f32
    %48 = vector.broadcast %cst : f32 to vector<144x64xf32>
    %49 = vector.broadcast %cst_11 : f32 to vector<144x64xf32>
    %50 = arith.select %47, %48, %49 : vector<144x64xi1>, vector<144x64xf32>
    %51 = tpu.iota {dimensions = array<i32: 0>} : vector<16x64xi32>
    %52 = tpu.iota {dimensions = array<i32: 1>} : vector<16x64xi32>
    %c2_i32_12 = arith.constant 2 : i32
    %53 = vector.broadcast %c2_i32_12 : i32 to vector<16x64xi32>
    %54 = arith.shrsi %51, %53 : vector<16x64xi32>
    %c16_i32 = arith.constant 16 : i32
    %55 = vector.broadcast %c16_i32 : i32 to vector<16x64xi32>
    %56 = arith.muli %54, %55 : vector<16x64xi32>
    %c3_i32_13 = arith.constant 3 : i32
    %57 = vector.broadcast %c3_i32_13 : i32 to vector<16x64xi32>
    %58 = arith.andi %51, %57 : vector<16x64xi32>
    %c2_i32_14 = arith.constant 2 : i32
    %59 = vector.broadcast %c2_i32_14 : i32 to vector<16x64xi32>
    %60 = arith.muli %58, %59 : vector<16x64xi32>
    %61 = arith.addi %56, %60 : vector<16x64xi32>
    %62 = arith.cmpi eq, %52, %61 : vector<16x64xi32>
    %cst_15 = arith.constant 1.000000e+00 : f32
    %cst_16 = arith.constant 0.000000e+00 : f32
    %63 = vector.broadcast %cst_15 : f32 to vector<16x64xf32>
    %64 = vector.broadcast %cst_16 : f32 to vector<16x64xf32>
    %65 = arith.select %62, %63, %64 : vector<16x64xi1>, vector<16x64xf32>
    %c0 = arith.constant 0 : index
    %c0_17 = arith.constant 0 : index
    %66 = vector.load %arg1[%c0, %c0_17] : memref<56x72xf32, #tpu.memory_space<vmem>>, vector<32x16xf32>
    %c32 = arith.constant 32 : index
    %c0_18 = arith.constant 0 : index
    %67 = vector.load %arg1[%c32, %c0_18] : memref<56x72xf32, #tpu.memory_space<vmem>>, vector<16x8xf32>
    %c48 = arith.constant 48 : index
    %c0_19 = arith.constant 0 : index
    %68 = vector.load %arg1[%c48, %c0_19] : memref<56x72xf32, #tpu.memory_space<vmem>>, vector<8x72xf32>
    %c0_20 = arith.constant 0 : index
    %c0_21 = arith.constant 0 : index
    %69 = vector.load %arg0[%c0_20, %c0_21] : memref<64x32xf32, #tpu.memory_space<vmem>>, vector<64x32xf32>
    %cst_22 = arith.constant dense<0.000000e+00> : vector<64x16xf32>
    %70 = tpu.matmul %69, %66, %cst_22 {dimension_numbers = #tpu.dot_dimension_numbers<[1], [0], [0], [1], [0, 0, 1, 1], [], []>} : vector<64x32xf32>, vector<32x16xf32>, vector<64x16xf32> -> vector<64x16xf32>
    %cst_23 = arith.constant 0.000000e+00 : f32
    %71 = vector.broadcast %cst_23 : f32 to vector<64x16xf32>
    %72 = arith.maximumf %70, %71 : vector<64x16xf32>
    %cst_24 = arith.constant dense<0.000000e+00> : vector<64x8xf32>
    %73 = tpu.matmul %72, %67, %cst_24 {dimension_numbers = #tpu.dot_dimension_numbers<[1], [0], [0], [1], [0, 0, 1, 1], [], []>} : vector<64x16xf32>, vector<16x8xf32>, vector<64x8xf32> -> vector<64x8xf32>
    %cst_25 = arith.constant 0.000000e+00 : f32
    %74 = vector.broadcast %cst_25 : f32 to vector<64x8xf32>
    %75 = arith.maximumf %73, %74 : vector<64x8xf32>
    %cst_26 = arith.constant dense<0.000000e+00> : vector<64x72xf32>
    %76 = tpu.matmul %75, %68, %cst_26 {dimension_numbers = #tpu.dot_dimension_numbers<[1], [0], [0], [1], [0, 0, 1, 1], [], []>} : vector<64x8xf32>, vector<8x72xf32>, vector<64x72xf32> -> vector<64x72xf32>
    %cst_27 = arith.constant dense<0.000000e+00> : vector<144x72xf32>
    %77 = tpu.matmul %50, %76, %cst_27 {dimension_numbers = #tpu.dot_dimension_numbers<[1], [0], [0], [1], [0, 0, 1, 1], [], []>} : vector<144x64xf32>, vector<64x72xf32>, vector<144x72xf32> -> vector<144x72xf32>
    %78 = vector.extract_strided_slice %77 {offsets = [0, 0], sizes = [16, 8], strides = [1, 1]} : vector<144x72xf32> to vector<16x8xf32>
    %79 = vector.extract_strided_slice %77 {offsets = [16, 8], sizes = [16, 8], strides = [1, 1]} : vector<144x72xf32> to vector<16x8xf32>
    %80 = arith.addf %78, %79 : vector<16x8xf32>
    %81 = vector.extract_strided_slice %77 {offsets = [32, 16], sizes = [16, 8], strides = [1, 1]} : vector<144x72xf32> to vector<16x8xf32>
    %82 = arith.addf %80, %81 : vector<16x8xf32>
    %83 = vector.extract_strided_slice %77 {offsets = [48, 24], sizes = [16, 8], strides = [1, 1]} : vector<144x72xf32> to vector<16x8xf32>
    %84 = arith.addf %82, %83 : vector<16x8xf32>
    %85 = vector.extract_strided_slice %77 {offsets = [64, 32], sizes = [16, 8], strides = [1, 1]} : vector<144x72xf32> to vector<16x8xf32>
    %86 = arith.addf %84, %85 : vector<16x8xf32>
    %87 = vector.extract_strided_slice %77 {offsets = [80, 40], sizes = [16, 8], strides = [1, 1]} : vector<144x72xf32> to vector<16x8xf32>
    %88 = arith.addf %86, %87 : vector<16x8xf32>
    %89 = vector.extract_strided_slice %77 {offsets = [96, 48], sizes = [16, 8], strides = [1, 1]} : vector<144x72xf32> to vector<16x8xf32>
    %90 = arith.addf %88, %89 : vector<16x8xf32>
    %91 = vector.extract_strided_slice %77 {offsets = [112, 56], sizes = [16, 8], strides = [1, 1]} : vector<144x72xf32> to vector<16x8xf32>
    %92 = arith.addf %90, %91 : vector<16x8xf32>
    %93 = vector.extract_strided_slice %77 {offsets = [128, 64], sizes = [16, 8], strides = [1, 1]} : vector<144x72xf32> to vector<16x8xf32>
    %94 = arith.addf %92, %93 : vector<16x8xf32>
    %cst_28 = arith.constant 0.000000e+00 : f32
    %95 = vector.broadcast %cst_28 : f32 to vector<16x8xf32>
    %96 = arith.maximumf %94, %95 : vector<16x8xf32>
    %cst_29 = arith.constant dense<0.000000e+00> : vector<16x16xf32>
    %97 = tpu.matmul %65, %72, %cst_29 {dimension_numbers = #tpu.dot_dimension_numbers<[1], [0], [0], [1], [0, 0, 1, 1], [], []>} : vector<16x64xf32>, vector<64x16xf32>, vector<16x16xf32> -> vector<16x16xf32>
    %98 = tpu.iota {dimensions = array<i32: 1>} : vector<16x8xi32>
    %c0_i32_30 = arith.constant 0 : i32
    %99 = vector.broadcast %c0_i32_30 : i32 to vector<16x8xi32>
    %100 = arith.cmpi eq, %98, %99 : vector<16x8xi32>
    %cst_31 = arith.constant 1.000000e+00 : f32
    %cst_32 = arith.constant 0.000000e+00 : f32
    %101 = vector.broadcast %cst_31 : f32 to vector<16x8xf32>
    %102 = vector.broadcast %cst_32 : f32 to vector<16x8xf32>
    %103 = arith.select %100, %101, %102 : vector<16x8xi1>, vector<16x8xf32>
    %104 = tpu.concatenate %96, %97, %103 in 1 : vector<16x8xf32>, vector<16x16xf32>, vector<16x8xf32> -> vector<16x32xf32>
    %c0_33 = arith.constant 0 : index
    %c0_34 = arith.constant 0 : index
    %105 = vector.load %arg2[%c0_33, %c0_34] : memref<32x128xf32, #tpu.memory_space<vmem>>, vector<32x128xf32>
    %cst_35 = arith.constant dense<0.000000e+00> : vector<16x128xf32>
    %106 = tpu.matmul %104, %105, %cst_35 {dimension_numbers = #tpu.dot_dimension_numbers<[1], [0], [0], [1], [0, 0, 1, 1], [], []>} : vector<16x32xf32>, vector<32x128xf32>, vector<16x128xf32> -> vector<16x128xf32>
    %cst_36 = arith.constant 0.000000e+00 : f32
    %107 = vector.broadcast %cst_36 : f32 to vector<16x128xf32>
    %108 = arith.maximumf %106, %107 : vector<16x128xf32>
    %c0_37 = arith.constant 0 : index
    %c0_38 = arith.constant 0 : index
    %109 = vector.load %arg3[%c0_37, %c0_38] : memref<16x128xf32, #tpu.memory_space<vmem>>, vector<16x128xf32>
    tpu.vector_store %arg3[%c0_37, %c0_38], %108 {strides = array<i32>} : memref<16x128xf32, #tpu.memory_space<vmem>>, vector<16x128xf32>,
    return
  }
}

</mosaic_0001>

<bundles_post_ra>
// kernel: image_embedding_forward.1
= control target key start
LH: loop header
LB: loop body
LE: loop exit
PB: predicated region body
PF: predicated region fallthrough
CT: control target
= control target key end

     0   :  { %s1651_s0 = inlined_call_operand.vmem [shape: f32[64,32], index: 0, kind: input, shape index: {}]   ;;  %s1652_s1 = inlined_call_operand.vmem [shape: f32[56,72], index: 1, kind: input, shape index: {}]   ;;  %s1653_s2 = inlined_call_operand.vmem [shape: f32[32,128], index: 2, kind: input, shape index: {}]   ;;  %s1654_s3 = inlined_call_operand.hbm [shape: f32[16,128], index: 3, kind: output, shape index: {}]  }
   0x1   :  { %v557_v0 = vld [vmem:[%s1652_s1 + $0x18] sm:$0xff]  ;;  %v556_v1 = vld [vmem:[%s1652_s1 + $0x10] sm:$0xff]  ;;  %v555_v2 = vld [vmem:[%s1652_s1 + $0x8] sm:$0xff] }
   0x2   :  { %606 = vmatpush.msra.mxu0 %v557_v0 }
   0x4   :  { %607 = vmatpush.msra.mxu0 %v556_v1 }
   0x5   :  { %8 = vsyncpa [#allocation3], 0  ;;  %v554_v3 = vld [vmem:[%s1652_s1] sm:$0xff]  ;;  %vm1655_vm0 = vcmask 261120   ;;  %v562_v5 = vld [vmem:[%s1651_s0 + $0x8] sm:$0xff]  ;;  %vm643_vm1 = vcmask 130048   ;;  %v15_v50 = vlaneseq }
   0x6   :  { %608 = vmatpush.msra.mxu0 %v555_v2  ;;  %v561_v4 = vld [vmem:[%s1651_s0] sm:$0xff]  ;;  %v563_v6 = vld [vmem:[%s1651_s0 + $0x10] sm:$0xff]  ;;  %v564_v7 = vld [vmem:[%s1651_s0 + $0x18] sm:$0xff]  ;;  %vm1656_vm2 = vcmask 64512   ;;  %v1240_v62 = vmov 0   ;;  %s1243_s14 = smov 104  }
   0x7   :  { %v565_v8 = vld [vmem:[%s1651_s0 + $0x20] sm:$0xff]  ;;  %v566_v9 = vld [vmem:[%s1651_s0 + $0x28] sm:$0xff]  ;;  %v567_v10 = vld [vmem:[%s1651_s0 + $0x30] sm:$0xff]  ;;  %v1389_v51 = vshrl.u32 %v15_v50, 7  ;;  %s1244_s15 = smov 120   ;;  %s1245_s16 = smov 96  }
   0x8   :  { %609 = vmatpush.msra.mxu0 %v554_v3  ;;  %v568_v11 = vld [vmem:[%s1651_s0 + $0x38] sm:$0xff]  ;;  %v559_v12 = vld [vmem:[%s1652_s1 + $0x28] sm:$0xff]  ;;  %v558_v13 = vld [vmem:[%s1652_s1 + $0x20] sm:$0xff]  ;;  %s1246_s17 = smov 8   ;;  %s1247_s18 = smov 88  }
   0x9   :  { %1130 = vmatmul.msk.f32.vlgmr.msra.gmra.mxu0 %vm1655_vm0, %v561_v4  ;;  %682 = vmatpush.msra.mxu1 %v559_v12  ;;  %v560_v30 = vld [vmem:[%s1652_s1 + $0x30] sm:$0xff]  ;;  %v20_v52 = vadd.s32 32, %v1389_v51  ;;  %v21_v53 = vadd.s32 40, %v1389_v51  ;;  %v36_v54 = vshra.s32 %v1389_v51, 4  ;;  %v54_v58 = vand.u32 15, %v1389_v51  ;;  %s1242_s1 = smov 112  }
   0xa   :  { %757 = vmatpush.msra.mxu2 %v560_v30  ;;  %v1398_v61 = vadd.s32 56, %v1389_v51  ;;  %s1248_s19 = smov 80   ;;  %s1249_s20 = smov 72  }
   0xb   :  { %683 = vmatpush.msra.mxu1 %v558_v13  ;;  %v40_v55 = vshra.s32 %v20_v52, 4  ;;  %v41_v56 = vshra.s32 %v21_v53, 4  ;;  %v58_v59 = vand.u32 15, %v20_v52  ;;  %v59_v60 = vand.u32 15, %v21_v53  ;;  %s1250_s21 = smov 24   ;;  %s1251_s22 = smov 64  }
   0xc   :  { %vm90_vm3 = vcmp.ge.s32.totalorder %v36_v54, 3  ;;  %vm72_vm6 = vcmp.ge.s32.totalorder %v36_v54, 6  ;;  %v180_v0 = vshra.s32 %v54_v58, 2  ;;  %s1082_s7 = sshll.u32 %s1654_s3, 4  ;;  %s1253_s8 = smov 128   ;;  %s1083_s7 = int_to_ptr.hbm [resolvable:$true] %s1082_s7 }
   0xd   :  { %vm94_vm4 = vcmp.ge.s32.totalorder %v40_v55, 3  ;;  %vm95_vm5 = vcmp.ge.s32.totalorder %v41_v56, 3  ;;  %v108_v63 = vsel %vm90_vm3, 1, %v1240_v62  ;;  %vm76_vm7 = vcmp.ge.s32.totalorder %v40_v55, 6 }
   0xe   :  { %v126_v1 = vsel %vm72_vm6, 2, %v108_v63  ;;  %v112_v2 = vsel %vm94_vm4, 1, %v1240_v62  ;;  %v184_v3 = vshra.s32 %v58_v59, 2  ;;  %vm77_vm8 = vcmp.ge.s32.totalorder %v41_v56, 6 }
   0xf   :  { %v144_v4 = vmul.u32 3, %v126_v1 }
  0x11   :  { %1131 = vmatmul.msk.f32.gmra.mxu0 %vm1655_vm0, %v562_v5  ;;  %v198_v5 = vmul.u32 2, %v180_v0  ;;  %v162_v12 = vsub.s32 %v36_v54, %v144_v4 }
  0x13   :  { %v216_v13 = vadd.s32 %v198_v5, %v126_v1  ;;  %v1241_v1 = vmov 0.0  }
  0x19   :  { %1132 = vmatmul.msk.f32.gmra.mxu0 %vm1655_vm0, %v563_v6  ;;  %v252_v6 = vand.u32 3, %v54_v58  ;;  %v1408_v58 = vand.u32 127, %v15_v50 }
  0x1b   :  { %v270_v30 = vmul.u32 2, %v252_v6 }
  0x21   :  { %1133 = vmatmul.msk.f32.gmra.mxu0 %vm1655_vm0, %v564_v7  ;;  %v130_v7 = vsel %vm76_vm7, 2, %v112_v2 }
  0x29   :  { %1134 = vmatmul.msk.f32.gmra.mxu0 %vm1655_vm0, %v565_v8  ;;  %v148_v8 = vmul.u32 3, %v130_v7 }
  0x31   :  { %1135 = vmatmul.msk.f32.gmra.mxu0 %vm1655_vm0, %v566_v9  ;;  %v202_v9 = vmul.u32 2, %v184_v3 }
  0x39   :  { %1136 = vmatmul.msk.f32.gmra.mxu0 %vm1655_vm0, %v567_v10  ;;  %v256_v10 = vand.u32 3, %v58_v59 }
  0x41   :  { %1137 = vmatmul.msk.f32.gmra.mxu0 %vm1655_vm0, %v568_v11  ;;  %v113_v11 = vsel %vm95_vm5, 1, %v1240_v62 }
  0x86   :  { %v1324_v14 = vpop.f32.mrf.mxu0 }
  0x87   :  { %v635_v15 = vmax.f32 %v1324_v14, 0.0 }
  0x89   :  { %1138 = vmatmul.msk.f32.vlgmr.msra.gmra.mxu1 %vm643_vm1, %v635_v15 }
  0x8e   :  { %v1330_v16 = vpop.f32.mrf.mxu0 }
  0x8f   :  { %v636_v17 = vmax.f32 %v1330_v16, 0.0 }
  0x91   :  { %1139 = vmatmul.msk.f32.gmra.mxu1 %vm643_vm1, %v636_v17 }
  0x96   :  { %v1336_v18 = vpop.f32.mrf.mxu0 }
  0x97   :  { %v637_v19 = vmax.f32 %v1336_v18, 0.0 }
  0x99   :  { %1140 = vmatmul.msk.f32.gmra.mxu1 %vm643_vm1, %v637_v19 }
  0x9e   :  { %v1342_v20 = vpop.f32.mrf.mxu0 }
  0x9f   :  { %v638_v21 = vmax.f32 %v1342_v20, 0.0 }
  0xa1   :  { %1141 = vmatmul.msk.f32.gmra.mxu1 %vm643_vm1, %v638_v21 }
  0xa6   :  { %v1348_v22 = vpop.f32.mrf.mxu0 }
  0xa7   :  { %v639_v23 = vmax.f32 %v1348_v22, 0.0 }
  0xa9   :  { %1142 = vmatmul.msk.f32.gmra.mxu1 %vm643_vm1, %v639_v23 }
  0xae   :  { %v1354_v24 = vpop.f32.mrf.mxu0 }
  0xaf   :  { %v640_v25 = vmax.f32 %v1354_v24, 0.0 }
  0xb1   :  { %1143 = vmatmul.msk.f32.gmra.mxu1 %vm643_vm1, %v640_v25 }
  0xb6   :  { %v1360_v26 = vpop.f32.mrf.mxu0 }
  0xb7   :  { %v641_v27 = vmax.f32 %v1360_v26, 0.0 }
  0xb9   :  { %1144 = vmatmul.msk.f32.gmra.mxu1 %vm643_vm1, %v641_v27 }
  0xbe   :  { %v1366_v28 = vpop.f32.mrf.mxu0 }
  0xbf   :  { %v642_v29 = vmax.f32 %v1366_v28, 0.0 }
  0xc1   :  { %1145 = vmatmul.msk.f32.gmra.mxu1 %vm643_vm1, %v642_v29 }
 0x106   :  { %v685_v31 = vpop.f32.mrf.mxu1 }
 0x107   :  { %v709_v32 = vmax.f32 %v685_v31, 0.0  ;;  %v131_v31 = vsel %vm77_vm8, 2, %v113_v11  ;;  %v1423_v11 = vadd.s32 8, %v1389_v51 }
 0x109   :  { %1146 = vmatmul.msk.f32.vlgmr.msra.gmra.mxu2 %vm1656_vm2, %v709_v32  ;;  %v166_v32 = vsub.s32 %v40_v55, %v148_v8  ;;  %v61_v55 = vand.u32 15, %v1398_v61 }
 0x10b   :  { %v187_v50 = vshra.s32 %v61_v55, 2 }
 0x10d   :  { %v205_v6 = vmul.u32 2, %v187_v50 }
 0x10e   :  { %v688_v33 = vpop.f32.mrf.mxu1 }
 0x10f   :  { %v710_v34 = vmax.f32 %v688_v33, 0.0  ;;  %v220_v33 = vadd.s32 %v202_v9, %v130_v7  ;;  %v259_v7 = vand.u32 3, %v61_v55 }
 0x111   :  { %1147 = vmatmul.msk.f32.gmra.mxu2 %vm1656_vm2, %v710_v34  ;;  %v274_v34 = vmul.u32 2, %v256_v10  ;;  %v277_v10 = vmul.u32 2, %v259_v7 }
 0x116   :  { %v691_v35 = vpop.f32.mrf.mxu1 }
 0x117   :  { %v711_v36 = vmax.f32 %v691_v35, 0.0  ;;  %v149_v35 = vmul.u32 3, %v131_v31 }
 0x119   :  { %1148 = vmatmul.msk.f32.gmra.mxu2 %vm1656_vm2, %v711_v36 }
 0x11e   :  { %v694_v37 = vpop.f32.mrf.mxu1 }
 0x11f   :  { %v712_v38 = vmax.f32 %v694_v37, 0.0  ;;  %v1094_v37 = vadd.s32 4294967295, %v216_v13 }
 0x121   :  { %1149 = vmatmul.msk.f32.gmra.mxu2 %vm1656_vm2, %v712_v38  ;;  %v288_v38 = vadd.s32 %v270_v30, %v162_v12  ;;  %vm324_vm9 = vcmp.ge.s32.totalorder %v1094_v37, 0  ;;  %vm342_vm10 = vcmp.lt.s32.totalorder %v1094_v37, 8 }
 0x122   :  { %vm360_vm11 = vmand %vm324_vm9, %vm342_vm10 }
 0x126   :  { %v697_v39 = vpop.f32.mrf.mxu1 }
 0x127   :  { %v713_v40 = vmax.f32 %v697_v39, 0.0  ;;  %v185_v39 = vshra.s32 %v59_v60, 2 }
 0x129   :  { %1150 = vmatmul.msk.f32.gmra.mxu2 %vm1656_vm2, %v713_v40  ;;  %v257_v40 = vand.u32 3, %v59_v60  ;;  %v203_v52 = vmul.u32 2, %v185_v39 }
 0x12b   :  { %v275_v53 = vmul.u32 2, %v257_v40  ;;  %v221_v60 = vadd.s32 %v203_v52, %v131_v31  ;;  %v22_v31 = vadd.s32 48, %v1389_v51 }
 0x12d   :  { %v1099_v3 = vadd.s32 4294967295, %v221_v60  ;;  %v42_v39 = vshra.s32 %v22_v31, 4  ;;  %v60_v40 = vand.u32 15, %v22_v31 }
 0x12e   :  { %v700_v41 = vpop.f32.mrf.mxu1 }
 0x12f   :  { %v714_v42 = vmax.f32 %v700_v41, 0.0  ;;  %v1098_v41 = vadd.s32 4294967295, %v220_v33  ;;  %v455_v8 = vmul.u32 8, %v1099_v3  ;;  %v37_v33 = vshra.s32 %v1423_v11, 4 }
 0x130   :  { %v258_v7 = vand.u32 3, %v60_v40 }
 0x131   :  { %1151 = vmatmul.msk.f32.gmra.mxu2 %vm1656_vm2, %v714_v42  ;;  %v292_v42 = vadd.s32 %v274_v34, %v166_v32  ;;  %vm328_vm13 = vcmp.ge.s32.totalorder %v1098_v41, 0  ;;  %vm346_vm1 = vcmp.lt.s32.totalorder %v1098_v41, 8  ;;  %v55_v34 = vand.u32 15, %v1423_v11 }
 0x132   :  { %vm364_vm9 = vmand %vm328_vm13, %vm346_vm1 }
 0x133   :  { %v1116_v54 = vadd.s32 4294967295, %v292_v42 }
 0x135   :  { %vm382_vm3 = vcmp.ge.s32.totalorder %v1116_v54, 0  ;;  %vm418_vm6 = vcmp.lt.s32.totalorder %v1116_v54, 8 }
 0x136   :  { %v703_v43 = vpop.f32.mrf.mxu1 }
 0x137   :  { %v715_v44 = vmax.f32 %v703_v43, 0.0  ;;  %v167_v43 = vsub.s32 %v41_v56, %v149_v35  ;;  %v454_v56 = vmul.u32 8, %v1098_v41  ;;  %v1432_v35 = vadd.s32 64, %v1389_v51 }
 0x138   :  { %v181_v41 = vshra.s32 %v55_v34, 2 }
 0x139   :  { %1152 = vmatmul.msk.f32.gmra.mxu2 %vm1656_vm2, %v715_v44  ;;  %v43_v44 = vshra.s32 %v1398_v61, 4  ;;  %v293_v63 = vadd.s32 %v275_v53, %v167_v43  ;;  %v472_v0 = vadd.s32 %v1116_v54, %v454_v56  ;;  %v253_v53 = vand.u32 3, %v55_v34 }
 0x13a   :  { %v276_v34 = vmul.u32 2, %v258_v7 }
 0x13b   :  { %vm97_vm8 = vcmp.ge.s32.totalorder %v43_v44, 3  ;;  %v1117_v4 = vadd.s32 4294967295, %v293_v63  ;;  %vm79_vm10 = vcmp.ge.s32.totalorder %v43_v44, 6  ;;  %v271_v60 = vmul.u32 2, %v253_v53 }
 0x13c   :  { %v115_v5 = vsel %vm97_vm8, 1, %v1240_v62  ;;  %vm91_vm8 = vcmp.ge.s32.totalorder %v37_v33, 3 }
 0x13d   :  { %v133_v9 = vsel %vm79_vm10, 2, %v115_v5  ;;  %v473_v32 = vadd.s32 %v1117_v4, %v455_v8  ;;  %v109_v52 = vsel %vm91_vm8, 1, %v1240_v62  ;;  %v44_v8 = vshra.s32 %v1432_v35, 4 }
 0x13e   :  { %v706_v45 = vpop.f32.mrf.mxu1  ;;  %v151_v13 = vmul.u32 3, %v133_v9  ;;  %v223_v30 = vadd.s32 %v205_v6, %v133_v9  ;;  %v186_v6 = vshra.s32 %v60_v40, 2  ;;  %v62_v9 = vand.u32 15, %v1432_v35 }
 0x13f   :  { %v716_v46 = vmax.f32 %v706_v45, 0.0  ;;  %v1112_v45 = vadd.s32 4294967295, %v288_v38 }
 0x140   :  { %v1101_v38 = vadd.s32 4294967295, %v223_v30  ;;  %v188_v35 = vshra.s32 %v62_v9, 2 }
 0x141   :  { %1153 = vmatmul.msk.f32.gmra.mxu2 %vm1656_vm2, %v716_v46  ;;  %v450_v46 = vmul.u32 8, %v1094_v37  ;;  %vm378_vm12 = vcmp.ge.s32.totalorder %v1112_v45, 0  ;;  %vm414_vm15 = vcmp.lt.s32.totalorder %v1112_v45, 8  ;;  %v169_v37 = vsub.s32 %v43_v44, %v151_v13 }
 0x142   :  { %vm396_vm14 = vmand %vm360_vm11, %vm378_vm12  ;;  %vm490_vm12 = vcmp.eq.s32.totalorder %v1408_v58, %v472_v0  ;;  %vm331_vm10 = vcmp.ge.s32.totalorder %v1101_v38, 0  ;;  %v199_v44 = vmul.u32 2, %v181_v41 }
 0x143   :  { %v468_v59 = vadd.s32 %v1112_v45, %v450_v46  ;;  %vm432_vm4 = vmand %vm396_vm14, %vm414_vm15  ;;  %vm329_vm15 = vcmp.ge.s32.totalorder %v1099_v3, 0  ;;  %v295_v43 = vadd.s32 %v277_v10, %v169_v37  ;;  %v457_v45 = vmul.u32 8, %v1101_v38 }
 0x144   :  { %vm400_vm11 = vmand %vm364_vm9, %vm382_vm3 }
 0x145   :  { %vm486_vm5 = vcmp.eq.s32.totalorder %v1408_v58, %v468_v59  ;;  %vm436_vm14 = vmand %vm400_vm11, %vm418_vm6  ;;  %vm73_vm6 = vcmp.ge.s32.totalorder %v37_v33, 6  ;;  %vm349_vm11 = vcmp.lt.s32.totalorder %v1101_v38, 8  ;;  %v1119_v54 = vadd.s32 4294967295, %v295_v43 }
 0x146   :  { %vm504_vm7 = vmand %vm432_vm4, %vm486_vm5  ;;  %vm347_vm4 = vcmp.lt.s32.totalorder %v1099_v3, 8  ;;  %vm383_vm5 = vcmp.ge.s32.totalorder %v1117_v4, 0  ;;  %v127_v55 = vsel %vm73_vm6, 2, %v109_v52 }
 0x147   :  { %v1414_v2 = vsel %vm504_vm7, 1.0, %v1241_v1  ;;  %vm419_vm7 = vcmp.lt.s32.totalorder %v1117_v4, 8  ;;  %vm508_vm0 = vmand %vm436_vm14, %vm490_vm12  ;;  %vm78_vm14 = vcmp.ge.s32.totalorder %v42_v39, 6  ;;  %v145_v59 = vmul.u32 3, %v127_v55 }
 0x148   :  { %v1426_v12 = vsel %vm508_vm0, 1.0, %v1241_v1  ;;  %vm365_vm13 = vmand %vm329_vm15, %vm347_vm4  ;;  %vm491_vm0 = vcmp.eq.s32.totalorder %v1408_v58, %v473_v32  ;;  %vm96_vm15 = vcmp.ge.s32.totalorder %v42_v39, 3  ;;  %v217_v56 = vadd.s32 %v199_v44, %v127_v55 }
 0x149   :  { %vm401_vm1 = vmand %vm365_vm13, %vm383_vm5  ;;  %v114_v63 = vsel %vm96_vm15, 1, %v1240_v62  ;;  %vm385_vm4 = vcmp.ge.s32.totalorder %v1119_v54, 0  ;;  %vm421_vm5 = vcmp.lt.s32.totalorder %v1119_v54, 8  ;;  %v475_v0 = vadd.s32 %v1119_v54, %v457_v45 }
 0x14a   :  { %vm437_vm3 = vmand %vm401_vm1, %vm419_vm7  ;;  %v132_v50 = vsel %vm78_vm14, 2, %v114_v63  ;;  %v163_v3 = vsub.s32 %v37_v33, %v145_v59  ;;  %v1095_v4 = vadd.s32 4294967295, %v217_v56  ;;  %v204_v33 = vmul.u32 2, %v186_v6 }
 0x14b   :  { %vm509_vm9 = vmand %vm437_vm3, %vm491_vm0  ;;  %v150_v5 = vmul.u32 3, %v132_v50  ;;  %vm493_vm1 = vcmp.eq.s32.totalorder %v1408_v58, %v475_v0  ;;  %v260_v45 = vand.u32 3, %v62_v9  ;;  %v206_v55 = vmul.u32 2, %v188_v35 }
 0x14c   :  { %v1437_v46 = vsel %vm509_vm9, 1.0, %v1241_v1  ;;  %vm367_vm12 = vmand %vm331_vm10, %vm349_vm11  ;;  %v289_v10 = vadd.s32 %v271_v60, %v163_v3  ;;  %vm325_vm0 = vcmp.ge.s32.totalorder %v1095_v4, 0  ;;  %vm343_vm6 = vcmp.lt.s32.totalorder %v1095_v4, 8 }
 0x14d   :  { %vm403_vm7 = vmand %vm367_vm12, %vm385_vm4  ;;  %v451_v13 = vmul.u32 8, %v1095_v4  ;;  %v168_v32 = vsub.s32 %v42_v39, %v150_v5  ;;  %vm80_vm9 = vcmp.ge.s32.totalorder %v44_v8, 6  ;;  %vm98_vm10 = vcmp.ge.s32.totalorder %v44_v8, 3 }
 0x14e   :  { %vm439_vm13 = vmand %vm403_vm7, %vm421_vm5  ;;  %v1113_v37 = vadd.s32 4294967295, %v289_v10  ;;  %v222_v40 = vadd.s32 %v204_v33, %v132_v50  ;;  %v116_v43 = vsel %vm98_vm10, 1, %v1240_v62  ;;  %v278_v59 = vmul.u32 2, %v260_v45 }
 0x14f   :  { %vm511_vm3 = vmand %vm439_vm13, %vm493_vm1  ;;  %v294_v41 = vadd.s32 %v276_v34, %v168_v32  ;;  %v134_v52 = vsel %vm80_vm9, 2, %v116_v43  ;;  %v18_v56 = vadd.s32 16, %v1389_v51  ;;  %v1460_v60 = vadd.s32 72, %v1389_v51 }
 0x150   :  { %v1446_v31 = vsel %vm511_vm3, 1.0, %v1241_v1  ;;  %vm1448_vm8 = vmand %vm325_vm0, %vm343_vm6  ;;  %vm379_vm11 = vcmp.ge.s32.totalorder %v1113_v37, 0  ;;  %vm415_vm12 = vcmp.lt.s32.totalorder %v1113_v37, 8  ;;  %v469_v39 = vadd.s32 %v1113_v37, %v451_v13 }
 0x151   :  { %vm397_vm14 = vmand %vm1448_vm8, %vm379_vm11  ;;  %v1100_v44 = vadd.s32 4294967295, %v222_v40  ;;  %v1118_v53 = vadd.s32 4294967295, %v294_v41  ;;  %v152_v54 = vmul.u32 3, %v134_v52  ;;  %vm783_vm5 = vcmask 523264  }
 0x152   :  { %vm433_vm15 = vmand %vm397_vm14, %vm415_vm12  ;;  %vm487_vm4 = vcmp.eq.s32.totalorder %v1408_v58, %v469_v39  ;;  %v224_v50 = vadd.s32 %v206_v55, %v134_v52  ;;  %v56_v3 = vand.u32 15, %v18_v56  ;;  %v1472_v4 = vshra.s32 %v1460_v60, 4 }
 0x153   :  { %vm505_vm7 = vmand %vm433_vm15, %vm487_vm4  ;;  %vm330_vm13 = vcmp.ge.s32.totalorder %v1100_v44, 0  ;;  %vm348_vm1 = vcmp.lt.s32.totalorder %v1100_v44, 8  ;;  %vm384_vm3 = vcmp.ge.s32.totalorder %v1118_v53, 0  ;;  %vm420_vm0 = vcmp.lt.s32.totalorder %v1118_v53, 8 }
 0x154   :  { %vm366_vm6 = vmand %vm330_vm13, %vm348_vm1  ;;  %v456_v63 = vmul.u32 8, %v1100_v44  ;;  %v170_v0 = vsub.s32 %v44_v8, %v152_v54  ;;  %v63_v5 = vand.u32 15, %v1460_v60  ;;  %v1102_v8 = vadd.s32 4294967295, %v224_v50 }
 0x155   :  { %vm402_vm8 = vmand %vm366_vm6, %vm384_vm3  ;;  %v540_v9 = vshra.s32 %v1389_v51, 2  ;;  %v182_v10 = vshra.s32 %v56_v3, 2  ;;  %v254_v13 = vand.u32 3, %v56_v3 }
 0x156   :  { %vm1478_vm9 = vmand %vm402_vm8, %vm420_vm0  ;;  %v474_v7 = vadd.s32 %v1118_v53, %v456_v63  ;;  %vm332_vm14 = vcmp.ge.s32.totalorder %v1102_v8, 0  ;;  %vm350_vm15 = vcmp.lt.s32.totalorder %v1102_v8, 8  ;;  %vm81_vm0 = vcmp.ge.s32.totalorder %v1472_v4, 6 }
 0x157   :  { %v200_v33 = vmul.u32 2, %v182_v10  ;;  %v272_v34 = vmul.u32 2, %v254_v13  ;;  %vm99_vm8 = vcmp.ge.s32.totalorder %v1472_v4, 3  ;;  %v189_v41 = vshra.s32 %v63_v5, 2 }
 0x158   :  { %vm492_vm12 = vcmp.eq.s32.totalorder %v1408_v58, %v474_v7  ;;  %v261_v43 = vand.u32 3, %v63_v5  ;;  %v542_v45 = vmul.u32 16, %v540_v9  ;;  %v117_v52 = vsel %vm99_vm8, 1, %v1240_v62 }
 0x159   :  { %vm510_vm4 = vmand %vm1478_vm9, %vm492_vm12  ;;  %v135_v44 = vsel %vm81_vm0, 2, %v117_v52  ;;  %v207_v53 = vmul.u32 2, %v189_v41 }
 0x15a   :  { %v1496_v37 = vsel %vm510_vm4, 1.0, %v1241_v1  ;;  %v279_v54 = vmul.u32 2, %v261_v43 }
 0x18c   :  { %v1383_v47 = vpop.f32.mrf.mxu2 }
 0x194   :  { %v1385_v48 = vpop.f32.mrf.mxu2 }
 0x19c   :  { %v1387_v49 = vpop.f32.mrf.mxu2 }
 0x1a4   :  { %v1394_v57 = vpop.f32.mrf.mxu2 }
 0x1ac   :  { %v1404_v36 = vpop.f32.mrf.mxu2 }
 0x1b4   :  { %v1411_v61 = vpop.f32.mrf.mxu2 }
 0x1bc   :  { %v777_v42 = vpop.f32.mrf.mxu2 }
 0x1c4   :  { %v780_v30 = vpop.f32.mrf.mxu2 }
 0x1c5   :  { %846 = vmatpush.msrb.mxu0 %v780_v30  ;;  %1176 = vmatpush.msrb.mxu1 %v780_v30 }
 0x1c6   :  { %1177 = vmatpush.msrb.mxu2 %v780_v30  ;;  %1178 = vmatpush.msra.mxu3 %v780_v30 }
 0x1c7   :  { %847 = vmatpush.msrb.mxu0 %v777_v42  ;;  %1179 = vmatpush.msrb.mxu1 %v777_v42 }
 0x1c8   :  { %1180 = vmatpush.msrb.mxu2 %v777_v42  ;;  %1181 = vmatpush.msra.mxu3 %v777_v42  ;;  %v1467_v42 = vsel %vm505_vm7, 1.0, %v1241_v1  ;;  %vm368_vm7 = vmand %vm332_vm14, %vm350_vm15 }
 0x1c9   :  { %848 = vmatpush.msrb.mxu0 %v1411_v61  ;;  %1182 = vmatpush.msrb.mxu1 %v1411_v61 }
 0x1ca   :  { %1183 = vmatpush.msrb.mxu2 %v1411_v61  ;;  %1184 = vmatpush.msra.mxu3 %v1411_v61  ;;  %v38_v61 = vshra.s32 %v18_v56, 4  ;;  %v225_v56 = vadd.s32 %v207_v53, %v135_v44 }
 0x1cb   :  { %849 = vmatpush.msrb.mxu0 %v1404_v36  ;;  %1185 = vmatpush.msrb.mxu1 %v1404_v36 }
 0x1cc   :  { %1186 = vmatpush.msrb.mxu2 %v1404_v36  ;;  %1187 = vmatpush.msra.mxu3 %v1404_v36  ;;  %v296_v36 = vadd.s32 %v278_v59, %v170_v0  ;;  %vm74_vm10 = vcmp.ge.s32.totalorder %v38_v61, 6  ;;  %vm92_vm11 = vcmp.ge.s32.totalorder %v38_v61, 3  ;;  %v153_v59 = vmul.u32 3, %v135_v44 }
 0x1cd   :  { %850 = vmatpush.msrb.mxu0 %v1394_v57  ;;  %1188 = vmatpush.msrb.mxu1 %v1394_v57  ;;  %v110_v32 = vsel %vm92_vm11, 1, %v1240_v62  ;;  %v26_v0 = vadd.s32 80, %v1389_v51  ;;  %v1103_v28 = vadd.s32 4294967295, %v225_v56 }
 0x1ce   :  { %1189 = vmatpush.msrb.mxu2 %v1394_v57  ;;  %1190 = vmatpush.msra.mxu3 %v1394_v57  ;;  %v1120_v30 = vadd.s32 4294967295, %v296_v36  ;;  %v458_v57 = vmul.u32 8, %v1102_v8  ;;  %v171_v50 = vsub.s32 %v1472_v4, %v153_v59 }
 0x1cf   :  { %851 = vmatpush.msrb.mxu0 %v1387_v49  ;;  %1191 = vmatpush.msrb.mxu1 %v1387_v49  ;;  %v46_v5 = vshra.s32 %v26_v0, 4  ;;  %v459_v26 = vmul.u32 8, %v1103_v28 }
 0x1d0   :  { %1192 = vmatpush.msrb.mxu2 %v1387_v49  ;;  %1193 = vmatpush.msra.mxu3 %v1387_v49  ;;  %vm386_vm13 = vcmp.ge.s32.totalorder %v1120_v30, 0  ;;  %vm422_vm1 = vcmp.lt.s32.totalorder %v1120_v30, 8  ;;  %v128_v49 = vsel %vm74_vm10, 2, %v110_v32  ;;  %v476_v38 = vadd.s32 %v1120_v30, %v458_v57 }
 0x1d1   :  { %852 = vmatpush.msrb.mxu0 %v1385_v48  ;;  %1194 = vmatpush.msrb.mxu1 %v1385_v48  ;;  %vm404_vm3 = vmand %vm368_vm7, %vm386_vm13  ;;  %v146_v35 = vmul.u32 3, %v128_v49  ;;  %v218_v40 = vadd.s32 %v200_v33, %v128_v49  ;;  %v297_v6 = vadd.s32 %v279_v54, %v171_v50  ;;  %vm333_vm13 = vcmp.ge.s32.totalorder %v1103_v28, 0 }
 0x1d2   :  { %1195 = vmatpush.msrb.mxu2 %v1385_v48  ;;  %1196 = vmatpush.msra.mxu3 %v1385_v48  ;;  %vm440_vm6 = vmand %vm404_vm3, %vm422_vm1  ;;  %vm494_vm9 = vcmp.eq.s32.totalorder %v1408_v58, %v476_v38  ;;  %vm351_vm1 = vcmp.lt.s32.totalorder %v1103_v28, 8  ;;  %vm82_vm8 = vcmp.ge.s32.totalorder %v46_v5, 6 }
 0x1d3   :  { %853 = vmatpush.msrb.mxu0 %v1383_v47  ;;  %1197 = vmatpush.msrb.mxu1 %v1383_v47  ;;  %v164_v48 = vsub.s32 %v38_v61, %v146_v35  ;;  %v1096_v39 = vadd.s32 4294967295, %v218_v40  ;;  %vm512_vm10 = vmand %vm440_vm6, %vm494_vm9  ;;  %v1532_v61 = vadd.s32 96, %v1389_v51  ;;  %v1121_v24 = vadd.s32 4294967295, %v297_v6 }
 0x1d4   :  { %1198 = vmatpush.msrb.mxu2 %v1383_v47  ;;  %1199 = vmatpush.msra.mxu3 %v1383_v47  ;;  %v544_v47 = vand.u32 3, %v1389_v51  ;;  %v530_v55 = vsel %vm512_vm10, 1.0, %v1241_v1  ;;  %vm100_vm10 = vcmp.ge.s32.totalorder %v46_v5, 3  ;;  %v29_v6 = vadd.s32 104, %v1389_v51 }
 0x1d5   :  { %1154 = vmatmul.msk.f32.vlgmr.msrb.gmra.mxu0 %vm783_vm5, %v1414_v2  ;;  %1158 = vmatmul.msk.f32.vlgmr.msrb.gmra.mxu1 %vm783_vm5, %v1426_v12  ;;  %v290_v2 = vadd.s32 %v272_v34, %v164_v48  ;;  %vm326_vm11 = vcmp.ge.s32.totalorder %v1096_v39, 0  ;;  %vm344_vm12 = vcmp.lt.s32.totalorder %v1096_v39, 8  ;;  %v452_v12 = vmul.u32 8, %v1096_v39 }
 0x1d6   :  { %1159 = vmatmul.msk.f32.vlgmr.msrb.gmra.mxu2 %vm783_vm5, %v1437_v46  ;;  %1161 = vmatmul.msk.f32.vlgmr.msra.gmra.mxu3 %vm783_vm5, %v1446_v31  ;;  %v546_v60 = vmul.u32 2, %v544_v47  ;;  %vm362_vm14 = vmand %vm326_vm11, %vm344_vm12  ;;  %v19_v46 = vadd.s32 24, %v1389_v51  ;;  %v1526_v31 = vadd.s32 88, %v1389_v51  ;;  %v118_v22 = vsel %vm100_vm10, 1, %v1240_v62 }
 0x1d7   :  { %1005 = vmatpush.msra.mxu2 %v642_v29  ;;  %v1114_v63 = vadd.s32 4294967295, %v290_v2  ;;  %vm369_vm11 = vmand %vm333_vm13, %vm351_vm1  ;;  %vm387_vm12 = vcmp.ge.s32.totalorder %v1121_v24, 0  ;;  %v477_v8 = vadd.s32 %v1121_v24, %v459_v26  ;;  %v136_v36 = vsel %vm82_vm8, 2, %v118_v22 }
 0x1d8   :  { %v548_v29 = vadd.s32 %v546_v60, %v542_v45  ;;  %v39_v4 = vshra.s32 %v19_v46, 4  ;;  %v154_v9 = vmul.u32 3, %v136_v36  ;;  %v57_v30 = vand.u32 15, %v19_v46 }
 0x1d9   :  { %1006 = vmatpush.msra.mxu2 %v641_v27  ;;  %vm380_vm15 = vcmp.ge.s32.totalorder %v1114_v63, 0  ;;  %vm416_vm4 = vcmp.lt.s32.totalorder %v1114_v63, 8  ;;  %v470_v3 = vadd.s32 %v1114_v63, %v452_v12  ;;  %v64_v27 = vand.u32 15, %v26_v0 }
 0x1da   :  { %vm398_vm7 = vmand %vm362_vm14, %vm380_vm15  ;;  %vm550_vm6 = vcmp.eq.s32.totalorder %v1408_v58, %v548_v29  ;;  %vm423_vm14 = vcmp.lt.s32.totalorder %v1121_v24, 8  ;;  %vm75_vm13 = vcmp.ge.s32.totalorder %v39_v4, 6  ;;  %vm93_vm1 = vcmp.ge.s32.totalorder %v39_v4, 3 }
 0x1db   :  { %1007 = vmatpush.msra.mxu2 %v640_v25  ;;  %vm434_vm3 = vmand %vm398_vm7, %vm416_vm4  ;;  %vm488_vm0 = vcmp.eq.s32.totalorder %v1408_v58, %v470_v3  ;;  %v552_v25 = vsel %vm550_vm6, 1.0, %v1241_v1  ;;  %vm495_vm7 = vcmp.eq.s32.totalorder %v1408_v58, %v477_v8  ;;  %v47_v20 = vshra.s32 %v1526_v31, 4 }
 0x1dc   :  { %vm506_vm9 = vmand %vm434_vm3, %vm488_vm0  ;;  %v111_v32 = vsel %vm93_vm1, 1, %v1240_v62  ;;  %v183_v33 = vshra.s32 %v57_v30, 2  ;;  %v48_v2 = vshra.s32 %v1532_v61, 4  ;;  %v66_v12 = vand.u32 15, %v1532_v61 }
 0x1dd   :  { %1008 = vmatpush.msra.mxu2 %v639_v23  ;;  %1155 = vmatmul.msk.f32.gmra.mxu0 %vm783_vm5, %v1467_v42  ;;  %v524_v7 = vsel %vm506_vm9, 1.0, %v1241_v1  ;;  %v190_v23 = vshra.s32 %v64_v27, 2  ;;  %v262_v42 = vand.u32 3, %v64_v27  ;;  %vm405_vm15 = vmand %vm369_vm11, %vm387_vm12  ;;  %v129_v18 = vsel %vm75_vm13, 2, %v111_v32 }
 0x1de   :  { %1160 = vmatmul.msk.f32.gmra.mxu2 %vm783_vm5, %v1496_v37  ;;  %1162 = vmatmul.msk.f32.gmra.mxu3 %vm783_vm5, %v530_v55  ;;  %vm441_vm4 = vmand %vm405_vm15, %vm423_vm14  ;;  %v65_v37 = vand.u32 15, %v1526_v31  ;;  %v147_v35 = vmul.u32 3, %v129_v18  ;;  %v201_v40 = vmul.u32 2, %v183_v33  ;;  %vm83_vm0 = vcmp.ge.s32.totalorder %v47_v20, 6 }
 0x1df   :  { %1009 = vmatpush.msra.mxu2 %v638_v21  ;;  %v208_v10 = vmul.u32 2, %v190_v23  ;;  %v280_v13 = vmul.u32 2, %v262_v42  ;;  %vm513_vm3 = vmand %vm441_vm4, %vm495_vm7  ;;  %v172_v21 = vsub.s32 %v46_v5, %v154_v9  ;;  %vm101_vm6 = vcmp.ge.s32.totalorder %v47_v20, 3 }
 0x1e0   :  { %v531_v34 = vsel %vm513_vm3, 1.0, %v1241_v1  ;;  %v191_v16 = vshra.s32 %v65_v37, 2  ;;  %v165_v45 = vsub.s32 %v39_v4, %v147_v35  ;;  %v219_v48 = vadd.s32 %v201_v40, %v129_v18 }
 0x1e1   :  { %1010 = vmatpush.msra.mxu2 %v637_v19  ;;  %v226_v57 = vadd.s32 %v208_v10, %v136_v36  ;;  %v255_v19 = vand.u32 3, %v57_v30  ;;  %v298_v38 = vadd.s32 %v280_v13, %v172_v21  ;;  %v119_v14 = vsel %vm101_vm6, 1, %v1240_v62 }
 0x1e2   :  { %v137_v52 = vsel %vm83_vm0, 2, %v119_v14  ;;  %v1097_v44 = vadd.s32 4294967295, %v219_v48  ;;  %v263_v55 = vand.u32 3, %v65_v37  ;;  %v192_v29 = vshra.s32 %v66_v12, 2 }
 0x1e3   :  { %1011 = vmatpush.msra.mxu2 %v636_v17  ;;  %v1104_v49 = vadd.s32 4294967295, %v226_v57  ;;  %v273_v41 = vmul.u32 2, %v255_v19  ;;  %v1122_v17 = vadd.s32 4294967295, %v298_v38  ;;  %v155_v54 = vmul.u32 3, %v137_v52 }
 0x1e4   :  { %vm327_vm13 = vcmp.ge.s32.totalorder %v1097_v44, 0  ;;  %vm345_vm1 = vcmp.lt.s32.totalorder %v1097_v44, 8  ;;  %v453_v56 = vmul.u32 8, %v1097_v44  ;;  %v281_v46 = vmul.u32 2, %v263_v55 }
 0x1e5   :  { %1012 = vmatpush.msra.mxu2 %v635_v15  ;;  %1156 = vmatmul.msk.f32.gmra.mxu0 %vm783_vm5, %v524_v7  ;;  %vm334_vm8 = vcmp.ge.s32.totalorder %v1104_v49, 0  ;;  %vm352_vm9 = vcmp.lt.s32.totalorder %v1104_v49, 8  ;;  %v460_v43 = vmul.u32 8, %v1104_v49  ;;  %v209_v15 = vmul.u32 2, %v191_v16  ;;  %vm363_vm3 = vmand %vm327_vm13, %vm345_vm1 }
 0x1e6   :  { %1163 = vmatmul.msk.f32.gmra.mxu3 %vm783_vm5, %v531_v34  ;;  %1172 = vmatmul.msk.f32.vlgmr.msra.gmra.mxu2 %vm783_vm5, %v552_v25  ;;  %vm370_vm10 = vmand %vm334_vm8, %vm352_vm9  ;;  %vm388_vm11 = vcmp.ge.s32.totalorder %v1122_v17, 0  ;;  %vm424_vm12 = vcmp.lt.s32.totalorder %v1122_v17, 8  ;;  %v291_v53 = vadd.s32 %v273_v41, %v165_v45  ;;  %v173_v63 = vsub.s32 %v47_v20, %v155_v54 }
 0x1e7   :  { %v478_v39 = vadd.s32 %v1122_v17, %v460_v43  ;;  %vm406_vm14 = vmand %vm370_vm10, %vm388_vm11  ;;  %v227_v47 = vadd.s32 %v209_v15, %v137_v52  ;;  %vm84_vm8 = vcmp.ge.s32.totalorder %v48_v2, 6  ;;  %v264_v61 = vand.u32 3, %v66_v12 }
 0x1e8   :  { %vm442_vm15 = vmand %vm406_vm14, %vm424_vm12  ;;  %v1115_v59 = vadd.s32 4294967295, %v291_v53  ;;  %v299_v50 = vadd.s32 %v281_v46, %v173_v63  ;;  %v30_v26 = vadd.s32 112, %v1389_v51  ;;  %v210_v25 = vmul.u32 2, %v192_v29 }
 0x1e9   :  { %vm496_vm4 = vcmp.eq.s32.totalorder %v1408_v58, %v478_v39  ;;  %v1105_v0 = vadd.s32 4294967295, %v227_v47  ;;  %v282_v4 = vmul.u32 2, %v264_v61  ;;  %v49_v42 = vshra.s32 %v29_v6, 4 }
 0x1ea   :  { %vm514_vm7 = vmand %vm442_vm15, %vm496_vm4  ;;  %vm381_vm0 = vcmp.ge.s32.totalorder %v1115_v59, 0  ;;  %vm417_vm6 = vcmp.lt.s32.totalorder %v1115_v59, 8  ;;  %v471_v31 = vadd.s32 %v1115_v59, %v453_v56  ;;  %vm102_vm15 = vcmp.ge.s32.totalorder %v48_v2, 3 }
 0x1eb   :  { %v532_v60 = vsel %vm514_vm7, 1.0, %v1241_v1  ;;  %vm399_vm9 = vmand %vm363_vm3, %vm381_vm0  ;;  %vm335_vm10 = vcmp.ge.s32.totalorder %v1105_v0, 0  ;;  %vm353_vm11 = vcmp.lt.s32.totalorder %v1105_v0, 8  ;;  %v461_v28 = vmul.u32 8, %v1105_v0 }
 0x1ec   :  { %vm435_vm12 = vmand %vm399_vm9, %vm417_vm6  ;;  %vm489_vm14 = vcmp.eq.s32.totalorder %v1408_v58, %v471_v31  ;;  %v1123_v3 = vadd.s32 4294967295, %v299_v50  ;;  %v120_v5 = vsel %vm102_vm15, 1, %v1240_v62  ;;  %v67_v8 = vand.u32 15, %v29_v6 }
 0x1ed   :  { %vm507_vm4 = vmand %vm435_vm12, %vm489_vm14  ;;  %v138_v24 = vsel %vm84_vm8, 2, %v120_v5  ;;  %v50_v36 = vshra.s32 %v30_v26, 4  ;;  %v68_v10 = vand.u32 15, %v30_v26  ;;  %v1583_v13 = vadd.s32 120, %v1389_v51 }
 0x1ee   :  { %1164 = vmatmul.msk.f32.gmra.mxu3 %vm783_vm5, %v532_v60  ;;  %v525_v27 = vsel %vm507_vm4, 1.0, %v1241_v1  ;;  %vm371_vm7 = vmand %vm335_vm10, %vm353_vm11  ;;  %vm389_vm13 = vcmp.ge.s32.totalorder %v1123_v3, 0  ;;  %vm425_vm1 = vcmp.lt.s32.totalorder %v1123_v3, 8  ;;  %v479_v7 = vadd.s32 %v1123_v3, %v461_v28 }
 0x1ef   :  { %1157 = vmatmul.msk.f32.gmra.mxu0 %vm783_vm5, %v525_v27  ;;  %v156_v22 = vmul.u32 3, %v138_v24  ;;  %vm407_vm3 = vmand %vm371_vm7, %vm389_vm13  ;;  %v228_v23 = vadd.s32 %v210_v25, %v138_v24  ;;  %vm85_vm9 = vcmp.ge.s32.totalorder %v49_v42, 6  ;;  %vm103_vm10 = vcmp.ge.s32.totalorder %v49_v42, 3 }
 0x1f0   :  { %vm443_vm0 = vmand %vm407_vm3, %vm425_vm1  ;;  %vm497_vm6 = vcmp.eq.s32.totalorder %v1408_v58, %v479_v7  ;;  %v193_v20 = vshra.s32 %v67_v8, 2  ;;  %v121_v32 = vsel %vm103_vm10, 1, %v1240_v62  ;;  %v265_v33 = vand.u32 3, %v67_v8 }
 0x1f1   :  { %v174_v9 = vsub.s32 %v48_v2, %v156_v22  ;;  %vm515_vm8 = vmand %vm443_vm0, %vm497_vm6  ;;  %v1106_v30 = vadd.s32 4294967295, %v228_v23  ;;  %v139_v18 = vsel %vm85_vm9, 2, %v121_v32  ;;  %vm86_vm15 = vcmp.ge.s32.totalorder %v50_v36, 6 }
 0x1f2   :  { %v533_v21 = vsel %vm515_vm8, 1.0, %v1241_v1  ;;  %v157_v37 = vmul.u32 3, %v139_v18  ;;  %v211_v49 = vmul.u32 2, %v193_v20  ;;  %v283_v38 = vmul.u32 2, %v265_v33 }
 0x1f3   :  { %v300_v57 = vadd.s32 %v282_v4, %v174_v9  ;;  %vm336_vm11 = vcmp.ge.s32.totalorder %v1106_v30, 0  ;;  %vm354_vm12 = vcmp.lt.s32.totalorder %v1106_v30, 8  ;;  %v462_v34 = vmul.u32 8, %v1106_v30 }
 0x1f4   :  { %vm372_vm14 = vmand %vm336_vm11, %vm354_vm12  ;;  %vm104_vm4 = vcmp.ge.s32.totalorder %v50_v36, 3  ;;  %v194_v35 = vshra.s32 %v68_v10, 2  ;;  %v266_v40 = vand.u32 3, %v68_v10  ;;  %v175_v16 = vsub.s32 %v49_v42, %v157_v37 }
 0x1f5   :  { %v1124_v19 = vadd.s32 4294967295, %v300_v57  ;;  %v229_v17 = vadd.s32 %v211_v49, %v139_v18  ;;  %v122_v43 = vsel %vm104_vm4, 1, %v1240_v62  ;;  %v51_v39 = vshra.s32 %v1583_v13, 4 }
 0x1f6   :  { %1165 = vmatmul.msk.f32.gmra.mxu3 %vm783_vm5, %v533_v21  ;;  %v212_v45 = vmul.u32 2, %v194_v35  ;;  %v284_v48 = vmul.u32 2, %v266_v40  ;;  %v301_v14 = vadd.s32 %v283_v38, %v175_v16  ;;  %v140_v15 = vsel %vm86_vm15, 2, %v122_v43 }
 0x1f7   :  { %vm390_vm7 = vcmp.ge.s32.totalorder %v1124_v19, 0  ;;  %vm426_vm13 = vcmp.lt.s32.totalorder %v1124_v19, 8  ;;  %v480_v41 = vadd.s32 %v1124_v19, %v462_v34  ;;  %v1107_v52 = vadd.s32 4294967295, %v229_v17 }
 0x1f8   :  { %vm408_vm1 = vmand %vm372_vm14, %vm390_vm7  ;;  %v158_v44 = vmul.u32 3, %v140_v15  ;;  %v230_v53 = vadd.s32 %v212_v45, %v140_v15  ;;  %v69_v54 = vand.u32 15, %v1583_v13  ;;  %v1125_v55 = vadd.s32 4294967295, %v301_v14 }
 0x1f9   :  { %vm444_vm3 = vmand %vm408_vm1, %vm426_vm13  ;;  %vm498_vm0 = vcmp.eq.s32.totalorder %v1408_v58, %v480_v41  ;;  %vm87_vm8 = vcmp.ge.s32.totalorder %v51_v39, 6  ;;  %vm105_vm9 = vcmp.ge.s32.totalorder %v51_v39, 3  ;;  %vm337_vm10 = vcmp.ge.s32.totalorder %v1107_v52, 0 }
 0x1fa   :  { %vm516_vm6 = vmand %vm444_vm3, %vm498_vm0  ;;  %vm355_vm11 = vcmp.lt.s32.totalorder %v1107_v52, 8  ;;  %v463_v2 = vmul.u32 8, %v1107_v52  ;;  %v176_v12 = vsub.s32 %v50_v36, %v158_v44  ;;  %vm391_vm14 = vcmp.ge.s32.totalorder %v1125_v55, 0 }
 0x1fb   :  { %v534_v47 = vsel %vm516_vm6, 1.0, %v1241_v1  ;;  %vm373_vm12 = vmand %vm337_vm10, %vm355_vm11  ;;  %vm427_vm15 = vcmp.lt.s32.totalorder %v1125_v55, 8  ;;  %v1108_v59 = vadd.s32 4294967295, %v230_v53  ;;  %v123_v56 = vsel %vm105_vm9, 1, %v1240_v62 }
 0x1fc   :  { %vm409_vm4 = vmand %vm373_vm12, %vm391_vm14  ;;  %v481_v60 = vadd.s32 %v1125_v55, %v463_v2  ;;  %v302_v63 = vadd.s32 %v284_v48, %v176_v12  ;;  %v141_v0 = vsel %vm87_vm8, 2, %v123_v56  ;;  %v195_v46 = vshra.s32 %v69_v54, 2 }
 0x1fd   :  { %vm445_vm7 = vmand %vm409_vm4, %vm427_vm15  ;;  %vm338_vm13 = vcmp.ge.s32.totalorder %v1108_v59, 0  ;;  %vm356_vm1 = vcmp.lt.s32.totalorder %v1108_v59, 8  ;;  %v464_v31 = vmul.u32 8, %v1108_v59  ;;  %v159_v50 = vmul.u32 3, %v141_v0 }
 0x1fe   :  { %1166 = vmatmul.msk.f32.gmra.mxu3 %vm783_vm5, %v534_v47  ;;  %vm499_vm3 = vcmp.eq.s32.totalorder %v1408_v58, %v481_v60  ;;  %v1126_v28 = vadd.s32 4294967295, %v302_v63  ;;  %vm374_vm0 = vmand %vm338_vm13, %vm356_vm1  ;;  %v213_v29 = vmul.u32 2, %v195_v46  ;;  %v267_v61 = vand.u32 3, %v69_v54 }
 0x1ff   :  { %vm517_vm6 = vmand %vm445_vm7, %vm499_vm3  ;;  %v177_v3 = vsub.s32 %v51_v39, %v159_v50  ;;  %v541_v5 = vshra.s32 %v1423_v11, 2  ;;  %v545_v6 = vand.u32 3, %v1423_v11  ;;  %v32_v26 = vadd.s32 128, %v1389_v51 }
 0x200   :  { %v535_v27 = vsel %vm517_vm6, 1.0, %v1241_v1  ;;  %vm392_vm8 = vcmp.ge.s32.totalorder %v1126_v28, 0  ;;  %vm428_vm9 = vcmp.lt.s32.totalorder %v1126_v28, 8  ;;  %v482_v24 = vadd.s32 %v1126_v28, %v464_v31 }
 0x201   :  { %vm410_vm10 = vmand %vm374_vm0, %vm392_vm8  ;;  %v231_v25 = vadd.s32 %v213_v29, %v141_v0  ;;  %v285_v4 = vmul.u32 2, %v267_v61  ;;  %v543_v7 = vmul.u32 16, %v541_v5  ;;  %v547_v22 = vmul.u32 2, %v545_v6 }
 0x202   :  { %vm446_vm11 = vmand %vm410_vm10, %vm428_vm9  ;;  %vm500_vm12 = vcmp.eq.s32.totalorder %v1408_v58, %v482_v24  ;;  %v52_v23 = vshra.s32 %v32_v26, 4  ;;  %v70_v42 = vand.u32 15, %v32_v26  ;;  %v33_v9 = vadd.s32 136, %v1389_v51 }
 0x203   :  { %vm518_vm14 = vmand %vm446_vm11, %vm500_vm12  ;;  %v1109_v11 = vadd.s32 4294967295, %v231_v25  ;;  %v303_v8 = vadd.s32 %v285_v4, %v177_v3  ;;  %v549_v36 = vadd.s32 %v547_v22, %v543_v7 }
 0x204   :  { %v536_v10 = vsel %vm518_vm14, 1.0, %v1241_v1  ;;  %vm88_vm15 = vcmp.ge.s32.totalorder %v52_v23, 6  ;;  %vm106_vm4 = vcmp.ge.s32.totalorder %v52_v23, 3  ;;  %v196_v13 = vshra.s32 %v70_v42, 2 }
 0x205   :  { %v1127_v30 = vadd.s32 4294967295, %v303_v8  ;;  %vm339_vm7 = vcmp.ge.s32.totalorder %v1109_v11, 0  ;;  %vm357_vm13 = vcmp.lt.s32.totalorder %v1109_v11, 8  ;;  %v465_v20 = vmul.u32 8, %v1109_v11 }
 0x206   :  { %1167 = vmatmul.msk.f32.gmra.mxu3 %vm783_vm5, %v535_v27  ;;  %vm375_vm1 = vmand %vm339_vm7, %vm357_vm13  ;;  %vm551_vm3 = vcmp.eq.s32.totalorder %v1408_v58, %v549_v36  ;;  %v124_v21 = vsel %vm106_vm4, 1, %v1240_v62  ;;  %v214_v57 = vmul.u32 2, %v196_v13  ;;  %v268_v32 = vand.u32 3, %v70_v42 }
 0x207   :  { %vm393_vm0 = vcmp.ge.s32.totalorder %v1127_v30, 0  ;;  %vm429_vm6 = vcmp.lt.s32.totalorder %v1127_v30, 8  ;;  %v483_v33 = vadd.s32 %v1127_v30, %v465_v20  ;;  %v553_v51 = vsel %vm551_vm3, 1.0, %v1241_v1  ;;  %v1041_v30 = vld [vmem:[%s1653_s2 + $0x10] sm:$0xff]  ;;  %v1040_v20 = vld [vmem:[%s1653_s2 + $0x8] sm:$0xff] }
 0x208   :  { %vm411_vm8 = vmand %vm375_vm1, %vm393_vm0  ;;  %1173 = vmatmul.msk.f32.gmra.mxu2 %vm783_vm5, %v553_v51  ;;  %v142_v34 = vsel %vm88_vm15, 2, %v124_v21  ;;  %v53_v18 = vshra.s32 %v33_v9, 4  ;;  %v71_v19 = vand.u32 15, %v33_v9  ;;  %v286_v38 = vmul.u32 2, %v268_v32  ;;  %v1039_v21 = vld [vmem:[%s1653_s2] sm:$0xff] }
 0x209   :  { %vm447_vm9 = vmand %vm411_vm8, %vm429_vm6  ;;  %vm501_vm10 = vcmp.eq.s32.totalorder %v1408_v58, %v483_v33  ;;  %v160_v37 = vmul.u32 3, %v142_v34  ;;  %v232_v49 = vadd.s32 %v214_v57, %v142_v34 }
 0x20a   :  { %vm89_vm11 = vcmp.ge.s32.totalorder %v53_v18, 6  ;;  %vm107_vm12 = vcmp.ge.s32.totalorder %v53_v18, 3  ;;  %v197_v35 = vshra.s32 %v71_v19, 2  ;;  %v269_v40 = vand.u32 3, %v71_v19  ;;  %vm519_vm14 = vmand %vm447_vm9, %vm501_vm10 }
 0x20b   :  { %v178_v41 = vsub.s32 %v52_v23, %v160_v37  ;;  %v1110_v16 = vadd.s32 4294967295, %v232_v49  ;;  %v125_v17 = vsel %vm107_vm12, 1, %v1240_v62  ;;  %v537_v44 = vsel %vm519_vm14, 1.0, %v1241_v1 }
 0x20c   :  { %v143_v43 = vsel %vm89_vm11, 2, %v125_v17  ;;  %v215_v45 = vmul.u32 2, %v197_v35  ;;  %v287_v52 = vmul.u32 2, %v269_v40 }
 0x20d   :  { %v304_v48 = vadd.s32 %v286_v38, %v178_v41  ;;  %vm340_vm15 = vcmp.ge.s32.totalorder %v1110_v16, 0  ;;  %vm358_vm4 = vcmp.lt.s32.totalorder %v1110_v16, 8  ;;  %v466_v14 = vmul.u32 8, %v1110_v16 }
 0x20e   :  { %1168 = vmatmul.msk.f32.gmra.mxu3 %vm783_vm5, %v536_v10  ;;  %v161_v15 = vmul.u32 3, %v143_v43  ;;  %v233_v39 = vadd.s32 %v215_v45, %v143_v43  ;;  %vm376_vm7 = vmand %vm340_vm15, %vm358_vm4 }
 0x20f   :  { %v1128_v53 = vadd.s32 4294967295, %v304_v48 }
 0x210   :  { %v179_v54 = vsub.s32 %v53_v18, %v161_v15  ;;  %v1111_v47 = vadd.s32 4294967295, %v233_v39 }
 0x211   :  { %vm394_vm13 = vcmp.ge.s32.totalorder %v1128_v53, 0  ;;  %vm430_vm1 = vcmp.lt.s32.totalorder %v1128_v53, 8  ;;  %v484_v55 = vadd.s32 %v1128_v53, %v466_v14 }
 0x212   :  { %vm412_vm3 = vmand %vm376_vm7, %vm394_vm13  ;;  %v305_v62 = vadd.s32 %v287_v52, %v179_v54  ;;  %vm341_vm0 = vcmp.ge.s32.totalorder %v1111_v47, 0  ;;  %vm359_vm6 = vcmp.lt.s32.totalorder %v1111_v47, 8  ;;  %v467_v2 = vmul.u32 8, %v1111_v47 }
 0x213   :  { %vm448_vm8 = vmand %vm412_vm3, %vm430_vm1  ;;  %vm502_vm9 = vcmp.eq.s32.totalorder %v1408_v58, %v484_v55  ;;  %vm1661_vm13 = vcmask 64512   ;;  %vm1662_vm1 = vcmask 261120  }
 0x214   :  { %vm520_vm10 = vmand %vm448_vm8, %vm502_vm9  ;;  %v1129_v12 = vadd.s32 4294967295, %v305_v62 }
 0x215   :  { %vm377_vm11 = vmand %vm341_vm0, %vm359_vm6  ;;  %v538_v56 = vsel %vm520_vm10, 1.0, %v1241_v1 }
 0x216   :  { %1169 = vmatmul.msk.f32.gmra.mxu3 %vm783_vm5, %v537_v44  ;;  %vm395_vm12 = vcmp.ge.s32.totalorder %v1129_v12, 0  ;;  %vm431_vm14 = vcmp.lt.s32.totalorder %v1129_v12, 8  ;;  %v485_v59 = vadd.s32 %v1129_v12, %v467_v2  ;;  %vm1663_vm3 = vmmov %vm1661_vm13 }
 0x217   :  { %vm413_vm15 = vmand %vm377_vm11, %vm395_vm12 }
 0x218   :  { %vm449_vm4 = vmand %vm413_vm15, %vm431_vm14  ;;  %vm503_vm2 = vcmp.eq.s32.totalorder %v1408_v58, %v485_v59 }
 0x219   :  { %vm521_vm7 = vmand %vm449_vm4, %vm503_vm2  ;;  %vm1020_vm2 = vcmp.eq.s32.totalorder %v1408_v58, 0  ;;  %v1042_v58 = vld [vmem:[%s1653_s2 + $0x18] sm:$0xff]  ;;  %s1252_s2 = smov [#allocation2]  }
 0x21a   :  { %v539_v60 = vsel %vm521_vm7, 1.0, %v1241_v1  ;;  %v1021_v7 = vsel %vm1020_vm2, 1.0, %v1241_v1  ;;  %1061 = vmatpush.msra.mxu1 %v1042_v58  ;;  %vm1664_vm0 = vmmov %vm1662_vm1  ;;  %s1080_s4 = sshll.u32 %s1252_s2, 4  ;;  %s1081_s4 = int_to_ptr.vmem [resolvable:$true] %s1080_s4 }
 0x21c   :  { %1062 = vmatpush.msra.mxu1 %v1041_v30 }
 0x21e   :  { %1170 = vmatmul.msk.f32.gmra.mxu3 %vm783_vm5, %v538_v56  ;;  %1063 = vmatpush.msra.mxu1 %v1040_v20 }
 0x220   :  { %1064 = vmatpush.msra.mxu1 %v1039_v21 }
 0x226   :  { %1171 = vmatmul.msk.f32.gmra.mxu3 %vm783_vm5, %v539_v60  ;;  %vm1036_vm5 = vcmask 195584  }
 0x252   :  { %v1621_v63 = vpop.f32.mrf.mxu0  ;;  %v867_v0 = vpop.f32.mrf.mxu1 }
 0x253   :  { %921 = vrot.lane.b32.xlu0 %v867_v0, %s1242_s1 }
 0x259   :  { %v870_v46 = vpop.f32.mrf.mxu2  ;;  %v876_v31 = vpop.f32.mrf.mxu3 }
 0x25a   :  { %v1623_v50 = vpop.f32.mrf.mxu0  ;;  %933 = vrot.lane.b32.xlu2 %v876_v31, %s1243_s14 }
 0x25b   :  { %923 = vrot.lane.b32.xlu0 %v870_v46, %s1242_s1 }
 0x261   :  { %v873_v28 = vpop.f32.mrf.mxu2  ;;  %v879_v29 = vpop.f32.mrf.mxu3 }
 0x262   :  { %931 = vrot.lane.b32.xlu1 %v873_v28, %s1243_s14  ;;  %v861_v61 = vpop.f32.mrf.mxu0 }
 0x263   :  { %911 = vrot.lane.b32.xlu0 %v861_v61, %s1244_s15 }
 0x269   :  { %v882_v3 = vpop.f32.mrf.mxu3  ;;  %v1014_v5 = vpop.f32.mrf.mxu2 }
 0x26a   :  { %941 = vrot.lane.b32.xlu1 %v879_v29, %s1245_s16  ;;  %1024 = vrot.lane.b32.xlu2 %v1014_v5, %s1246_s17 }
 0x26c   :  { %v864_v6 = vpop.f32.mrf.mxu0 }
 0x271   :  { %v885_v26 = vpop.f32.mrf.mxu3 }
 0x272   :  { %943 = vrot.lane.b32.xlu1 %v882_v3, %s1245_s16  ;;  %913 = vrot.lane.b32.xlu2 %v864_v6, %s1244_s15 }
 0x279   :  { %v888_v27 = vpop.f32.mrf.mxu3 }
 0x27a   :  { %951 = vrot.lane.b32.xlu2 %v885_v26, %s1247_s18  ;;  %953 = vrot.lane.b32.xlu0 %v888_v27, %s1247_s18 }
 0x281   :  { %v891_v24 = vpop.f32.mrf.mxu3 }
 0x282   :  { %961 = vrot.lane.b32.xlu1 %v891_v24, %s1248_s19 }
 0x289   :  { %v894_v25 = vpop.f32.mrf.mxu3 }
 0x28a   :  { %963 = vrot.lane.b32.xlu1 %v894_v25, %s1248_s19 }
 0x28b   :  { %v1017_v23 = vpop.f32.mrf.mxu2 }
 0x291   :  { %v897_v4 = vpop.f32.mrf.mxu3 }
 0x292   :  { %971 = vrot.lane.b32.xlu0 %v897_v4, %s1249_s20 }
 0x299   :  { %v900_v22 = vpop.f32.mrf.mxu3 }
 0x29a   :  { %973 = vrot.lane.b32.xlu1 %v900_v22, %s1249_s20  ;;  %1031 = vrot.lane.b32.xlu0 %v1021_v7, %s1250_s21 }
 0x2a1   :  { %v903_v42 = vpop.f32.mrf.mxu3 }
 0x2a2   :  { %1026 = vrot.lane.b32.xlu0 %v1017_v23, %s1246_s17  ;;  %981 = vrot.lane.b32.xlu2 %v903_v42, %s1251_s22 }
 0x2a9   :  { %v906_v11 = vpop.f32.mrf.mxu3 }
 0x2aa   :  { %983 = vrot.lane.b32.xlu2 %v906_v11, %s1251_s22 }
 0x2b4   :  { %v934_v36 = vpop.permute.xlu2 %933 }
 0x2c4   :  { %v1025_v13 = vpop.permute.xlu2 %1024 }
 0x2c5   :  { %v922_v8 = vpop.permute.xlu0 %921 }
 0x2cc   :  { %v914_v32 = vpop.permute.xlu2 %913 }
 0x2cd   :  { %v924_v10 = vpop.permute.xlu0 %923  ;;  %v918_v38 = vadd.f32 %v914_v32, %v1623_v50 }
 0x2cf   :  { %v928_v40 = vadd.f32 %v924_v10, %v918_v38 }
 0x2d1   :  { %v938_v48 = vadd.f32 %v934_v36, %v928_v40 }
 0x2d4   :  { %v932_v9 = vpop.permute.xlu1 %931  ;;  %v952_v19 = vpop.permute.xlu2 %951 }
 0x2d5   :  { %v912_v57 = vpop.permute.xlu0 %911 }
 0x2d6   :  { %v917_v33 = vadd.f32 %v912_v57, %v1621_v63 }
 0x2d8   :  { %v927_v34 = vadd.f32 %v922_v8, %v917_v33 }
 0x2da   :  { %v937_v18 = vadd.f32 %v932_v9, %v927_v34 }
 0x2dc   :  { %v942_v1 = vpop.permute.xlu1 %941 }
 0x2dd   :  { %v947_v35 = vadd.f32 %v942_v1, %v937_v18 }
 0x2df   :  { %v957_v41 = vadd.f32 %v952_v19, %v947_v35 }
 0x2e4   :  { %v944_v51 = vpop.permute.xlu1 %943 }
 0x2e5   :  { %v948_v15 = vadd.f32 %v944_v51, %v938_v48 }
 0x2ec   :  { %v954_v49 = vpop.permute.xlu0 %953 }
 0x2ed   :  { %v958_v52 = vadd.f32 %v954_v49, %v948_v15 }
 0x2f4   :  { %v962_v37 = vpop.permute.xlu1 %961 }
 0x2f5   :  { %v967_v17 = vadd.f32 %v962_v37, %v957_v41 }
 0x2fc   :  { %v982_v16 = vpop.permute.xlu2 %981  ;;  %v964_v43 = vpop.permute.xlu1 %963 }
 0x2fd   :  { %v968_v53 = vadd.f32 %v964_v43, %v958_v52 }
 0x304   :  { %v972_v45 = vpop.permute.xlu0 %971  ;;  %v984_v47 = vpop.permute.xlu2 %983 }
 0x305   :  { %v977_v14 = vadd.f32 %v972_v45, %v967_v17 }
 0x307   :  { %v987_v39 = vadd.f32 %v982_v16, %v977_v14 }
 0x309   :  { %v989_v44 = vmax.f32 %v987_v39, 0.0 }
 0x30b   :  { %v1034_v54 = vsel %vm1661_vm13, %v989_v44, %v1025_v13 }
 0x30c   :  { %v974_v55 = vpop.permute.xlu1 %973  ;;  %v1032_v62 = vpop.permute.xlu0 %1031 }
 0x30d   :  { %v978_v2 = vadd.f32 %v974_v55, %v968_v53  ;;  %v1037_v12 = vsel %vm1036_vm5, %v1034_v54, %v1032_v62 }
 0x30e   :  { %1174 = vmatmul.msk.f32.vlgmr.msra.gmra.mxu1 %vm1662_vm1, %v1037_v12 }
 0x30f   :  { %v988_v59 = vadd.f32 %v984_v47, %v978_v2 }
 0x311   :  { %v990_v56 = vmax.f32 %v988_v59, 0.0 }
 0x314   :  { %v1027_v60 = vpop.permute.xlu0 %1026 }
 0x315   :  { %v1035_v63 = vsel %vm1663_vm3, %v990_v56, %v1027_v60 }
 0x316   :  { %v1038_v0 = vsel %vm1036_vm5, %v1035_v63, %v1032_v62 }
 0x317   :  { %1175 = vmatmul.msk.f32.gmra.mxu1 %vm1664_vm0, %v1038_v0 }
 0x38b   :  { %v1066_v46 = vpop.f32.mrf.mxu1 }
 0x38c   :  { %v1072_v31 = vmax.f32 %v1066_v46, 0.0 }
 0x38e   :  { %1074 = vst [vmem:[#allocation2] sm:$0xff] %v1072_v31 }
 0x394   :  { %v1069_v50 = vpop.f32.mrf.mxu1 }
 0x395   :  { %v1073_v28 = vmax.f32 %v1069_v50, 0.0 }
 0x397   :  { %1075 = vst [vmem:[#allocation2 + $0x8] sm:$0xff] %v1073_v28 }
 0x398   :  { %1088 = dma.vmem_to_hbm [thread:$0]  %s1081_s4, 256, %s1083_s7, [#allocation3], %s1253_s8, %s1253_s8, %s1246_s17  }
 0x399   :  { %1238 = dma.done.wait [#allocation3], 256  }
 0x39a   :  { %1239 = vsyncadd [#allocation3], 4294967040 }
 0x39b   :  { %1093 = vsyncpa [#allocation3], 1 }

</bundles_post_ra>
